<compile_context>
chip_gen: v7x
topology: tpu7x:2x2x1
jax: 0.10.0
libtpu: 0.0.40
codegen_flags: <defaults>
</compile_context>

<pallas_src>
import jax
import jax.numpy as jnp
from jax import lax
from jax.experimental import pallas as pl
from jax.experimental.pallas import tpu as pltpu

IN_FEATURES = 53
N_HIDDEN = 32          # Config.cfg.hyper.n_hidden (small synthetic choice)
N_LAYERS = 2           # Config.cfg.hyper.n_layers (fused kernel assumes 2)
BN_EPS = 1e-5

assert N_LAYERS == 2, "fused wavefront kernel is specialized for 2 LSTM layers"

_VMEM_SPEC = pl.BlockSpec(memory_space=pltpu.MemorySpace.VMEM)


# ---------------------------------------------------------------------------
# Fused forward kernel: front dense stack -> interleaved 2-layer LSTM ->
# tail dense stack (final layer transposed for a lane-dense (1,L) store).
#
# Packed parameter slabs (all f32, carved with static slices):
#   a_ref (54, 128):  rows 0:53  w0 (BN1-folded),  row 53  b0'
#   b_ref (97, 256):  rows 0:32  Wih0 scattered into fused gate cols,
#                     rows 32:96 W_rec = [[Whh0|Wih1],[0|Whh1]] (fused cols),
#                     row  96    b_cat = [b_lstm0 | b_lstm1] (fused cols)
#   c_ref (162, 32):  rows 0:128 w1', row 128 b1', rows 129:161 w2', row 161 b2'
#   d_ref (35, 64):   rows 0:32  w3,  row 32 b3,  row 33 w4^T, row 34 b4 (bcast)
# ---------------------------------------------------------------------------
def _fused_forward_kernel(x_ref, a_ref, b_ref, c_ref, d_ref, o_ref,
                          seq_buf, xw_buf):
    H = N_HIDDEN
    L = x_ref.shape[0]
    f32 = jnp.float32

    # ---- front dense stack (BN + bias already folded into w/b) -------------
    h = jnp.maximum(
        jnp.dot(x_ref[...], a_ref[0:IN_FEATURES, :], preferred_element_type=f32)
        + a_ref[IN_FEATURES:IN_FEATURES + 1, :], 0.0)               # (L, 128)
    h = jnp.maximum(
        jnp.dot(h, c_ref[0:128, :], preferred_element_type=f32)
        + c_ref[128:129, :], 0.0)                                   # (L, H)
    h = jnp.maximum(
        jnp.dot(h, c_ref[129:129 + H, :], preferred_element_type=f32)
        + c_ref[129 + H:130 + H, :], 0.0)                           # (L, H)

    # ---- batched LSTM-layer-0 input projection (+ layer-1 bias columns) ----
    # xw_buf[t] = [xw_i0, b_i1, xw_f0, b_f1, xw_g0, b_g1, xw_o0, b_o1]
    xw_buf[...] = (
        jnp.dot(h, b_ref[0:H, :], preferred_element_type=f32)
        + b_ref[3 * H:3 * H + 1, :])                                # (L, 8H)

    w_rec = b_ref[H:3 * H, :]                                       # (2H, 8H)

    # Half-tanh sigmoid trick constants (i/f/o cols were pre-scaled by 0.5):
    # act = alpha*tanh(gates) + beta  ->  sigmoid for i/f/o lanes, tanh for g.
    lane = lax.broadcasted_iota(jnp.int32, (1, 8 * H), 1)
    is_g = (lane >= 4 * H) & (lane < 6 * H)
    alpha = jnp.where(is_g, 1.0, 0.5).astype(f32)
    beta = jnp.where(is_g, 0.0, 0.5).astype(f32)

    def fused_step(xw_row, hc):
        """One wavefront step: layer-0 time t and layer-1 time t-1 fused."""
        h_prev, c_prev = hc                                          # (1, 2H) each
        gates = xw_row + jnp.dot(h_prev, w_rec, preferred_element_type=f32)
        tt = jnp.tanh(gates)                                         # (1, 8H)
        act = alpha * tt + beta
        i = act[:, 0:2 * H]
        f = act[:, 2 * H:4 * H]
        g = act[:, 4 * H:6 * H]
        o = act[:, 6 * H:8 * H]
        c_new = f * c_prev + i * g                                   # (1, 2H)
        h_new = o * jnp.tanh(c_new)                                  # (1, 2H)
        return h_new, c_new

    # ---- prologue: layer-0 at t=0 (zero initial state -> no recurrent mm) --
    row0 = xw_buf[0:1, :]
    act0 = alpha * jnp.tanh(row0) + beta
    c00 = act0[:, 0:H] * act0[:, 4 * H:5 * H]                        # i0 * g0
    h00 = act0[:, 6 * H:7 * H] * jnp.tanh(c00)                       # o0 * tanh(c0)
    zero_h = jnp.zeros((1, H), f32)
    carry0 = (jnp.concatenate([h00, zero_h], axis=1),
              jnp.concatenate([c00, zero_h], axis=1))

    # ---- wavefront recurrence: step s does layer-0@s and layer-1@(s-1) -----
    def body(s, hc):
        h_new, c_new = fused_step(xw_buf[pl.ds(s, 1), :], hc)
        seq_buf[pl.ds(s - 1, 1), :] = h_new[:, H:2 * H]              # layer-1 out
        return (h_new, c_new)

    unroll = True if L <= 16 else 8
    hc_last = lax.fori_loop(1, L, body, carry0, unroll=unroll)

    # ---- epilogue: trailing layer-1 step at t = L-1 -------------------------
    # (layer-0 half of this step is recomputed garbage and ignored; the
    #  layer-1 columns of xw row L-1 hold exactly b_lstm1, as required.)
    h_fin, _ = fused_step(xw_buf[L - 1:L, :], hc_last)
    seq_buf[L - 1:L, :] = h_fin[:, H:2 * H]

    # ---- tail dense stack; final layer transposed -> lane-dense (1,L) ------
    h3 = jnp.maximum(
        jnp.dot(seq_buf[...], d_ref[0:H, :], preferred_element_type=f32)
        + d_ref[H:H + 1, :], 0.0)                                    # (L, 64)
    o_ref[...] = jnp.maximum(
        jnp.dot(d_ref[H + 1:H + 2, :], h3.T, preferred_element_type=f32)
        + d_ref[H + 2:H + 3, 0:1], 0.0)                              # (1, L)


def dscovry_forward(x, q):
    """x: (N, 53) float32; q: packed/folded parameter slabs."""
    L = x.shape[0]
    # ~2.4 KB of f32 per row actually used; allow generous headroom, cap at
    # v7x's 64 MiB physical VMEM (larger L needs chunking -- see TODO above).
    vmem_limit = int(min(64 << 20, max(16 << 20, 6144 * L + (2 << 20))))
    out = pl.pallas_call(
        _fused_forward_kernel,
        out_shape=jax.ShapeDtypeStruct((1, L), jnp.float32),
        in_specs=[_VMEM_SPEC] * 5,
        out_specs=_VMEM_SPEC,
        scratch_shapes=[
            pltpu.VMEM((L, N_HIDDEN), jnp.float32),         # seq_buf (layer-1 h)
            pltpu.VMEM((L, 8 * N_HIDDEN), jnp.float32),     # xw_buf (fused gates)
        ],
        compiler_params=pltpu.CompilerParams(vmem_limit_bytes=vmem_limit),
    )(x, q["slab_a"], q["slab_b"], q["slab_c"], q["slab_d"])
    return out.reshape(L, 1)


# ---------------------------------------------------------------------------
# Parameter preparation: fold BN + bias, pre-scale/fuse LSTM gate columns,
# pack everything into 4 slabs grouped by last dimension.
# ---------------------------------------------------------------------------
def prepare_params(p):
    H = N_HIDDEN
    GS = (0.5, 0.5, 1.0, 0.5)   # sigmoid half-tanh pre-scale per gate (i,f,g,o)

    def fuse_gate_cols(g0, g1):
        """g0 / g1: (rows, 4H) in PyTorch gate order (i,f,g,o) for layer-0 /
        layer-1 column blocks (or None for zeros).  Returns (rows, 8H) in the
        fused column order [i0,i1,f0,f1,g0,g1,o0,o1] with 0.5 pre-scale."""
        rows = (g0 if g0 is not None else g1).shape[0]
        out = jnp.zeros((rows, 8 * H), jnp.float32)
        for gi in range(4):
            if g0 is not None:
                out = out.at[:, (2 * gi) * H:(2 * gi + 1) * H].set(
                    GS[gi] * g0[:, gi * H:(gi + 1) * H])
            if g1 is not None:
                out = out.at[:, (2 * gi + 1) * H:(2 * gi + 2) * H].set(
                    GS[gi] * g1[:, gi * H:(gi + 1) * H])
        return out

    # slab A: linear + bn1 folded  (W' = W*scale, b' = b*scale + shift).
    w0 = p["w0"] * p["bn1_scale"][None, :]
    b0 = (p["b0"] * p["bn1_scale"] + p["bn1_shift"]).reshape(1, -1)
    slab_a = jnp.concatenate([w0, b0], axis=0)                       # (54, 128)

    # slab C: linear1 + bn2 ; linear2 + bn2 (same bn2, as in the module).
    w1 = p["w1"] * p["bn2_scale"][None, :]
    b1 = (p["b1"] * p["bn2_scale"] + p["bn2_shift"]).reshape(1, -1)
    w2 = p["w2"] * p["bn2_scale"][None, :]
    b2 = (p["b2"] * p["bn2_scale"] + p["bn2_shift"]).reshape(1, -1)
    slab_c = jnp.concatenate([w1, b1, w2, b2], axis=0)               # (162, 32)

    # slab B: fused LSTM weights.
    wih0 = fuse_gate_cols(p["w_ih_t"][0], None)                      # (32, 256)
    w_rec_top = fuse_gate_cols(p["w_hh_t"][0], p["w_ih_t"][1])       # (32, 256)
    w_rec_bot = fuse_gate_cols(None, p["w_hh_t"][1])                 # (32, 256)
    b_cat = fuse_gate_cols(p["b_lstm"][0], p["b_lstm"][1])           # (1, 256)
    slab_b = jnp.concatenate([wih0, w_rec_top, w_rec_bot, b_cat], axis=0)

    # slab D: tail linears (w4 stored as a row; b4 broadcast into a row).
    b4row = jnp.full((1, 64), p["b4"][0], jnp.float32)
    slab_d = jnp.concatenate(
        [p["w3"], p["b3"].reshape(1, -1), p["w4"].T, b4row], axis=0)  # (35, 64)

    return {"slab_a": slab_a, "slab_b": slab_b,
            "slab_c": slab_c, "slab_d": slab_d}


# ---------------------------------------------------------------------------
# Deterministic "raw" parameter init (shapes from the module's __init__).
# Weight matrices stored pre-transposed as (in_features, out_features).
# ---------------------------------------------------------------------------
def init_params(key):
    H = N_HIDDEN
    ks = jax.random.split(key, 16)

    def u(k, shape, scale=0.1):
        return jax.random.uniform(k, shape, jnp.float32, -scale, scale)

    p = {}
    p["w0"] = u(ks[0], (IN_FEATURES, 128)); p["b0"] = u(ks[1], (128,))
    p["w1"] = u(ks[2], (128, H));           p["b1"] = u(ks[3], (H,))
    p["w2"] = u(ks[4], (H, H));             p["b2"] = u(ks[5], (H,))

    # BatchNorm1d (eval): gamma/beta/running stats -> scale & shift.
    g1, beta1 = 1.0 + u(ks[6], (128,)), u(ks[7], (128,))
    rm1, rv1 = u(ks[8], (128,)), 1.0 + jnp.abs(u(ks[9], (128,)))
    p["bn1_scale"] = g1 / jnp.sqrt(rv1 + BN_EPS)
    p["bn1_shift"] = beta1 - rm1 * p["bn1_scale"]

    g2, beta2 = 1.0 + u(ks[10], (H,)), u(ks[11], (H,))
    rm2, rv2 = u(ks[12], (H,)), 1.0 + jnp.abs(u(ks[13], (H,)))
    p["bn2_scale"] = g2 / jnp.sqrt(rv2 + BN_EPS)
    p["bn2_shift"] = beta2 - rm2 * p["bn2_scale"]

    # LSTM weights pre-transposed to (n_layers, in, 4H); b_lstm = b_ih + b_hh.
    kk = jax.random.split(ks[14], 3)
    p["w_ih_t"] = u(kk[0], (N_LAYERS, H, 4 * H))
    p["w_hh_t"] = u(kk[1], (N_LAYERS, H, 4 * H))
    p["b_lstm"] = u(kk[2], (N_LAYERS, 1, 4 * H))

    kk2 = jax.random.split(ks[15], 4)
    p["w3"] = u(kk2[0], (H, 64)); p["b3"] = u(kk2[1], (64,))
    p["w4"] = u(kk2[2], (64, 1)); p["b4"] = u(kk2[3], (1,))
    return p


# ---------------------------------------------------------------------------
# Pure-JAX reference on the RAW (unfolded) parameters — validates the BN fold,
# the 0.5 gate pre-scaling, the fused/interleaved recurrence and the layouts.
# ---------------------------------------------------------------------------
def reference_forward(x, p):
    H = N_HIDDEN

    def lin_bn_relu(h, w, b, scale, shift):
        return jnp.maximum((h @ w + b) * scale + shift, 0.0)

    h = lin_bn_relu(x, p["w0"], p["b0"], p["bn1_scale"], p["bn1_shift"])
    h = lin_bn_relu(h, p["w1"], p["b1"], p["bn2_scale"], p["bn2_shift"])
    h = lin_bn_relu(h, p["w2"], p["b2"], p["bn2_scale"], p["bn2_shift"])

    seq = h
    for l in range(N_LAYERS):
        xw = seq @ p["w_ih_t"][l] + p["b_lstm"][l]      # (L, 4H)
        w_hh = p["w_hh_t"][l]

        def step(carry, xw_t):
            hh, cc = carry
            gates = xw_t + hh @ w_hh
            i = jax.nn.sigmoid(gates[0:H])
            f = jax.nn.sigmoid(gates[H:2 * H])
            g = jnp.tanh(gates[2 * H:3 * H])
            o = jax.nn.sigmoid(gates[3 * H:4 * H])
            cc = f * cc + i * g
            hh = o * jnp.tanh(cc)
            return (hh, cc), hh

        (_, _), seq = lax.scan(
            step, (jnp.zeros((H,), jnp.float32), jnp.zeros((H,), jnp.float32)), xw)

    h = jnp.maximum(seq @ p["w3"] + p["b3"], 0.0)
    h = jnp.maximum(h @ p["w4"] + p["b4"], 0.0)
    return h


if __name__ == "__main__":
    N = 8                                   # rows (== LSTM sequence length L)
    x = jax.random.normal(jax.random.PRNGKey(0), (N, IN_FEATURES), jnp.float32)
    raw_params = init_params(jax.random.PRNGKey(1))
    params = prepare_params(raw_params)

    out = jax.block_until_ready(dscovry_forward(x, params))

    ref = reference_forward(x, raw_params)
    assert out.shape == (N, 1), out.shape
    max_err = float(jnp.max(jnp.abs(out - ref)))
    assert jnp.allclose(out, ref, atol=5e-4, rtol=1e-3), ("mismatch vs reference", max_err)

    print("KERNEL_OK")
</pallas_src>

<mosaic_0001>
module attributes {stable_mosaic.version = 11 : i64} {
  func.func @_fused_forward_kernel(%arg0: memref<8x53xf32, #tpu.memory_space<vmem>>, %arg1: memref<54x128xf32, #tpu.memory_space<vmem>>, %arg2: memref<97x256xf32, #tpu.memory_space<vmem>>, %arg3: memref<162x32xf32, #tpu.memory_space<vmem>>, %arg4: memref<35x64xf32, #tpu.memory_space<vmem>>, %arg5: memref<1x8xf32, #tpu.memory_space<vmem>>, %arg6: memref<8x32xf32, #tpu.memory_space<vmem>>, %arg7: memref<8x256xf32, #tpu.memory_space<vmem>>) attributes {dimension_semantics = [], scalar_prefetch = 0 : i64, scratch_operands = 2 : i64, tpu.core_type = #tpu.core_type<tc>} {
    %c0 = arith.constant 0 : index
    %c0_0 = arith.constant 0 : index
    %0 = vector.load %arg0[%c0, %c0_0] : memref<8x53xf32, #tpu.memory_space<vmem>>, vector<8x53xf32>
    %c0_1 = arith.constant 0 : index
    %c0_2 = arith.constant 0 : index
    %1 = vector.load %arg1[%c0_1, %c0_2] : memref<54x128xf32, #tpu.memory_space<vmem>>, vector<53x128xf32>
    %cst = arith.constant dense<0.000000e+00> : vector<8x128xf32>
    %2 = tpu.matmul %0, %1, %cst {dimension_numbers = #tpu.dot_dimension_numbers<[1], [0], [0], [1], [0, 0, 1, 1], [], []>} : vector<8x53xf32>, vector<53x128xf32>, vector<8x128xf32> -> vector<8x128xf32>
    %c53 = arith.constant 53 : index
    %c0_3 = arith.constant 0 : index
    %3 = vector.load %arg1[%c53, %c0_3] : memref<54x128xf32, #tpu.memory_space<vmem>>, vector<1x128xf32>
    %4 = vector.broadcast %3 : vector<1x128xf32> to vector<8x128xf32>
    %5 = arith.addf %2, %4 : vector<8x128xf32>
    %cst_4 = arith.constant 0.000000e+00 : f32
    %6 = vector.broadcast %cst_4 : f32 to vector<8x128xf32>
    %7 = arith.maximumf %5, %6 : vector<8x128xf32>
    %c0_5 = arith.constant 0 : index
    %c0_6 = arith.constant 0 : index
    %8 = vector.load %arg3[%c0_5, %c0_6] : memref<162x32xf32, #tpu.memory_space<vmem>>, vector<128x32xf32>
    %cst_7 = arith.constant dense<0.000000e+00> : vector<8x32xf32>
    %9 = tpu.matmul %7, %8, %cst_7 {dimension_numbers = #tpu.dot_dimension_numbers<[1], [0], [0], [1], [0, 0, 1, 1], [], []>} : vector<8x128xf32>, vector<128x32xf32>, vector<8x32xf32> -> vector<8x32xf32>
    %c128 = arith.constant 128 : index
    %c0_8 = arith.constant 0 : index
    %10 = vector.load %arg3[%c128, %c0_8] : memref<162x32xf32, #tpu.memory_space<vmem>>, vector<1x32xf32>
    %11 = vector.broadcast %10 : vector<1x32xf32> to vector<8x32xf32>
    %12 = arith.addf %9, %11 : vector<8x32xf32>
    %cst_9 = arith.constant 0.000000e+00 : f32
    %13 = vector.broadcast %cst_9 : f32 to vector<8x32xf32>
    %14 = arith.maximumf %12, %13 : vector<8x32xf32>
    %c129 = arith.constant 129 : index
    %c0_10 = arith.constant 0 : index
    %15 = vector.load %arg3[%c129, %c0_10] : memref<162x32xf32, #tpu.memory_space<vmem>>, vector<32x32xf32>
    %cst_11 = arith.constant dense<0.000000e+00> : vector<8x32xf32>
    %16 = tpu.matmul %14, %15, %cst_11 {dimension_numbers = #tpu.dot_dimension_numbers<[1], [0], [0], [1], [0, 0, 1, 1], [], []>} : vector<8x32xf32>, vector<32x32xf32>, vector<8x32xf32> -> vector<8x32xf32>
    %c161 = arith.constant 161 : index
    %c0_12 = arith.constant 0 : index
    %17 = vector.load %arg3[%c161, %c0_12] : memref<162x32xf32, #tpu.memory_space<vmem>>, vector<1x32xf32>
    %18 = vector.broadcast %17 : vector<1x32xf32> to vector<8x32xf32>
    %19 = arith.addf %16, %18 : vector<8x32xf32>
    %cst_13 = arith.constant 0.000000e+00 : f32
    %20 = vector.broadcast %cst_13 : f32 to vector<8x32xf32>
    %21 = arith.maximumf %19, %20 : vector<8x32xf32>
    %c0_14 = arith.constant 0 : index
    %c0_15 = arith.constant 0 : index
    %22 = vector.load %arg2[%c0_14, %c0_15] : memref<97x256xf32, #tpu.memory_space<vmem>>, vector<32x256xf32>
    %cst_16 = arith.constant dense<0.000000e+00> : vector<8x256xf32>
    %23 = tpu.matmul %21, %22, %cst_16 {dimension_numbers = #tpu.dot_dimension_numbers<[1], [0], [0], [1], [0, 0, 1, 1], [], []>} : vector<8x32xf32>, vector<32x256xf32>, vector<8x256xf32> -> vector<8x256xf32>
    %c96 = arith.constant 96 : index
    %c0_17 = arith.constant 0 : index
    %24 = vector.load %arg2[%c96, %c0_17] : memref<97x256xf32, #tpu.memory_space<vmem>>, vector<1x256xf32>
    %25 = vector.broadcast %24 : vector<1x256xf32> to vector<8x256xf32>
    %26 = arith.addf %23, %25 : vector<8x256xf32>
    %c0_18 = arith.constant 0 : index
    %c0_19 = arith.constant 0 : index
    %27 = vector.load %arg7[%c0_18, %c0_19] : memref<8x256xf32, #tpu.memory_space<vmem>>, vector<8x256xf32>
    tpu.vector_store %arg7[%c0_18, %c0_19], %26 {strides = array<i32>} : memref<8x256xf32, #tpu.memory_space<vmem>>, vector<8x256xf32>,
    %c32 = arith.constant 32 : index
    %c0_20 = arith.constant 0 : index
    %28 = vector.load %arg2[%c32, %c0_20] : memref<97x256xf32, #tpu.memory_space<vmem>>, vector<64x256xf32>
    %29 = tpu.iota {dimensions = array<i32: 1>} : vector<1x256xi32>
    %c128_i32 = arith.constant 128 : i32
    %30 = vector.broadcast %c128_i32 : i32 to vector<1x256xi32>
    %31 = arith.cmpi sge, %29, %30 : vector<1x256xi32>
    %c192_i32 = arith.constant 192 : i32
    %32 = vector.broadcast %c192_i32 : i32 to vector<1x256xi32>
    %33 = arith.cmpi slt, %29, %32 : vector<1x256xi32>
    %34 = arith.andi %31, %33 : vector<1x256xi1>
    %cst_21 = arith.constant 1.000000e+00 : f32
    %cst_22 = arith.constant 5.000000e-01 : f32
    %35 = vector.broadcast %cst_21 : f32 to vector<1x256xf32>
    %36 = vector.broadcast %cst_22 : f32 to vector<1x256xf32>
    %37 = arith.select %34, %35, %36 : vector<1x256xi1>, vector<1x256xf32>
    %cst_23 = arith.constant 0.000000e+00 : f32
    %cst_24 = arith.constant 5.000000e-01 : f32
    %38 = vector.broadcast %cst_23 : f32 to vector<1x256xf32>
    %39 = vector.broadcast %cst_24 : f32 to vector<1x256xf32>
    %40 = arith.select %34, %38, %39 : vector<1x256xi1>, vector<1x256xf32>
    %c0_25 = arith.constant 0 : index
    %c0_26 = arith.constant 0 : index
    %41 = vector.load %arg7[%c0_25, %c0_26] : memref<8x256xf32, #tpu.memory_space<vmem>>, vector<1x256xf32>
    %42 = math.tanh %41 : vector<1x256xf32>
    %43 = arith.mulf %37, %42 : vector<1x256xf32>
    %44 = arith.addf %43, %40 : vector<1x256xf32>
    %45 = vector.extract_strided_slice %44 {offsets = [0, 0], sizes = [1, 32], strides = [1, 1]} : vector<1x256xf32> to vector<1x32xf32>
    %46 = vector.extract_strided_slice %44 {offsets = [0, 128], sizes = [1, 32], strides = [1, 1]} : vector<1x256xf32> to vector<1x32xf32>
    %47 = arith.mulf %45, %46 : vector<1x32xf32>
    %48 = vector.extract_strided_slice %44 {offsets = [0, 192], sizes = [1, 32], strides = [1, 1]} : vector<1x256xf32> to vector<1x32xf32>
    %49 = math.tanh %47 : vector<1x32xf32>
    %50 = arith.mulf %48, %49 : vector<1x32xf32>
    %cst_27 = arith.constant 0.000000e+00 : f32
    %51 = vector.broadcast %cst_27 : f32 to vector<1x32xf32>
    %52 = tpu.concatenate %50, %51 in 1 : vector<1x32xf32>, vector<1x32xf32> -> vector<1x64xf32>
    %53 = tpu.concatenate %47, %51 in 1 : vector<1x32xf32>, vector<1x32xf32> -> vector<1x64xf32>
    %c1_i32 = arith.constant 1 : i32
    %54 = arith.index_cast %c1_i32 : i32 to index
    %c0_28 = arith.constant 0 : index
    %55 = vector.load %arg7[%54, %c0_28] : memref<8x256xf32, #tpu.memory_space<vmem>>, vector<1x256xf32>
    %cst_29 = arith.constant dense<0.000000e+00> : vector<1x256xf32>
    %56 = tpu.matmul %52, %28, %cst_29 {dimension_numbers = #tpu.dot_dimension_numbers<[1], [0], [0], [1], [0, 0, 1, 1], [], []>} : vector<1x64xf32>, vector<64x256xf32>, vector<1x256xf32> -> vector<1x256xf32>
    %57 = arith.addf %55, %56 : vector<1x256xf32>
    %58 = math.tanh %57 : vector<1x256xf32>
    %59 = arith.mulf %37, %58 : vector<1x256xf32>
    %60 = arith.addf %59, %40 : vector<1x256xf32>
    %61 = vector.extract_strided_slice %60 {offsets = [0, 0], sizes = [1, 64], strides = [1, 1]} : vector<1x256xf32> to vector<1x64xf32>
    %62 = vector.extract_strided_slice %60 {offsets = [0, 64], sizes = [1, 64], strides = [1, 1]} : vector<1x256xf32> to vector<1x64xf32>
    %63 = vector.extract_strided_slice %60 {offsets = [0, 128], sizes = [1, 64], strides = [1, 1]} : vector<1x256xf32> to vector<1x64xf32>
    %64 = vector.extract_strided_slice %60 {offsets = [0, 192], sizes = [1, 64], strides = [1, 1]} : vector<1x256xf32> to vector<1x64xf32>
    %65 = arith.mulf %62, %53 : vector<1x64xf32>
    %66 = arith.mulf %61, %63 : vector<1x64xf32>
    %67 = arith.addf %65, %66 : vector<1x64xf32>
    %68 = math.tanh %67 : vector<1x64xf32>
    %69 = arith.mulf %64, %68 : vector<1x64xf32>
    %70 = vector.extract_strided_slice %69 {offsets = [0, 32], sizes = [1, 32], strides = [1, 1]} : vector<1x64xf32> to vector<1x32xf32>
    %c1_i32_30 = arith.constant 1 : i32
    %71 = arith.subi %c1_i32, %c1_i32_30 : i32
    %72 = arith.index_cast %71 : i32 to index
    %c0_31 = arith.constant 0 : index
    %73 = vector.load %arg6[%72, %c0_31] : memref<8x32xf32, #tpu.memory_space<vmem>>, vector<1x32xf32>
    tpu.vector_store %arg6[%72, %c0_31], %70 {strides = array<i32>} : memref<8x32xf32, #tpu.memory_space<vmem>>, vector<1x32xf32>,
    %c2_i32 = arith.constant 2 : i32
    %74 = arith.index_cast %c2_i32 : i32 to index
    %c0_32 = arith.constant 0 : index
    %75 = vector.load %arg7[%74, %c0_32] : memref<8x256xf32, #tpu.memory_space<vmem>>, vector<1x256xf32>
    %cst_33 = arith.constant dense<0.000000e+00> : vector<1x256xf32>
    %76 = tpu.matmul %69, %28, %cst_33 {dimension_numbers = #tpu.dot_dimension_numbers<[1], [0], [0], [1], [0, 0, 1, 1], [], []>} : vector<1x64xf32>, vector<64x256xf32>, vector<1x256xf32> -> vector<1x256xf32>
    %77 = arith.addf %75, %76 : vector<1x256xf32>
    %78 = math.tanh %77 : vector<1x256xf32>
    %79 = arith.mulf %37, %78 : vector<1x256xf32>
    %80 = arith.addf %79, %40 : vector<1x256xf32>
    %81 = vector.extract_strided_slice %80 {offsets = [0, 0], sizes = [1, 64], strides = [1, 1]} : vector<1x256xf32> to vector<1x64xf32>
    %82 = vector.extract_strided_slice %80 {offsets = [0, 64], sizes = [1, 64], strides = [1, 1]} : vector<1x256xf32> to vector<1x64xf32>
    %83 = vector.extract_strided_slice %80 {offsets = [0, 128], sizes = [1, 64], strides = [1, 1]} : vector<1x256xf32> to vector<1x64xf32>
    %84 = vector.extract_strided_slice %80 {offsets = [0, 192], sizes = [1, 64], strides = [1, 1]} : vector<1x256xf32> to vector<1x64xf32>
    %85 = arith.mulf %82, %67 : vector<1x64xf32>
    %86 = arith.mulf %81, %83 : vector<1x64xf32>
    %87 = arith.addf %85, %86 : vector<1x64xf32>
    %88 = math.tanh %87 : vector<1x64xf32>
    %89 = arith.mulf %84, %88 : vector<1x64xf32>
    %90 = vector.extract_strided_slice %89 {offsets = [0, 32], sizes = [1, 32], strides = [1, 1]} : vector<1x64xf32> to vector<1x32xf32>
    %c1_i32_34 = arith.constant 1 : i32
    %91 = arith.subi %c2_i32, %c1_i32_34 : i32
    %92 = arith.index_cast %91 : i32 to index
    %c0_35 = arith.constant 0 : index
    %93 = vector.load %arg6[%92, %c0_35] : memref<8x32xf32, #tpu.memory_space<vmem>>, vector<1x32xf32>
    tpu.vector_store %arg6[%92, %c0_35], %90 {strides = array<i32>} : memref<8x32xf32, #tpu.memory_space<vmem>>, vector<1x32xf32>,
    %c3_i32 = arith.constant 3 : i32
    %94 = arith.index_cast %c3_i32 : i32 to index
    %c0_36 = arith.constant 0 : index
    %95 = vector.load %arg7[%94, %c0_36] : memref<8x256xf32, #tpu.memory_space<vmem>>, vector<1x256xf32>
    %cst_37 = arith.constant dense<0.000000e+00> : vector<1x256xf32>
    %96 = tpu.matmul %89, %28, %cst_37 {dimension_numbers = #tpu.dot_dimension_numbers<[1], [0], [0], [1], [0, 0, 1, 1], [], []>} : vector<1x64xf32>, vector<64x256xf32>, vector<1x256xf32> -> vector<1x256xf32>
    %97 = arith.addf %95, %96 : vector<1x256xf32>
    %98 = math.tanh %97 : vector<1x256xf32>
    %99 = arith.mulf %37, %98 : vector<1x256xf32>
    %100 = arith.addf %99, %40 : vector<1x256xf32>
    %101 = vector.extract_strided_slice %100 {offsets = [0, 0], sizes = [1, 64], strides = [1, 1]} : vector<1x256xf32> to vector<1x64xf32>
    %102 = vector.extract_strided_slice %100 {offsets = [0, 64], sizes = [1, 64], strides = [1, 1]} : vector<1x256xf32> to vector<1x64xf32>
    %103 = vector.extract_strided_slice %100 {offsets = [0, 128], sizes = [1, 64], strides = [1, 1]} : vector<1x256xf32> to vector<1x64xf32>
    %104 = vector.extract_strided_slice %100 {offsets = [0, 192], sizes = [1, 64], strides = [1, 1]} : vector<1x256xf32> to vector<1x64xf32>
    %105 = arith.mulf %102, %87 : vector<1x64xf32>
    %106 = arith.mulf %101, %103 : vector<1x64xf32>
    %107 = arith.addf %105, %106 : vector<1x64xf32>
    %108 = math.tanh %107 : vector<1x64xf32>
    %109 = arith.mulf %104, %108 : vector<1x64xf32>
    %110 = vector.extract_strided_slice %109 {offsets = [0, 32], sizes = [1, 32], strides = [1, 1]} : vector<1x64xf32> to vector<1x32xf32>
    %c1_i32_38 = arith.constant 1 : i32
    %111 = arith.subi %c3_i32, %c1_i32_38 : i32
    %112 = arith.index_cast %111 : i32 to index
    %c0_39 = arith.constant 0 : index
    %113 = vector.load %arg6[%112, %c0_39] : memref<8x32xf32, #tpu.memory_space<vmem>>, vector<1x32xf32>
    tpu.vector_store %arg6[%112, %c0_39], %110 {strides = array<i32>} : memref<8x32xf32, #tpu.memory_space<vmem>>, vector<1x32xf32>,
    %c4_i32 = arith.constant 4 : i32
    %114 = arith.index_cast %c4_i32 : i32 to index
    %c0_40 = arith.constant 0 : index
    %115 = vector.load %arg7[%114, %c0_40] : memref<8x256xf32, #tpu.memory_space<vmem>>, vector<1x256xf32>
    %cst_41 = arith.constant dense<0.000000e+00> : vector<1x256xf32>
    %116 = tpu.matmul %109, %28, %cst_41 {dimension_numbers = #tpu.dot_dimension_numbers<[1], [0], [0], [1], [0, 0, 1, 1], [], []>} : vector<1x64xf32>, vector<64x256xf32>, vector<1x256xf32> -> vector<1x256xf32>
    %117 = arith.addf %115, %116 : vector<1x256xf32>
    %118 = math.tanh %117 : vector<1x256xf32>
    %119 = arith.mulf %37, %118 : vector<1x256xf32>
    %120 = arith.addf %119, %40 : vector<1x256xf32>
    %121 = vector.extract_strided_slice %120 {offsets = [0, 0], sizes = [1, 64], strides = [1, 1]} : vector<1x256xf32> to vector<1x64xf32>
    %122 = vector.extract_strided_slice %120 {offsets = [0, 64], sizes = [1, 64], strides = [1, 1]} : vector<1x256xf32> to vector<1x64xf32>
    %123 = vector.extract_strided_slice %120 {offsets = [0, 128], sizes = [1, 64], strides = [1, 1]} : vector<1x256xf32> to vector<1x64xf32>
    %124 = vector.extract_strided_slice %120 {offsets = [0, 192], sizes = [1, 64], strides = [1, 1]} : vector<1x256xf32> to vector<1x64xf32>
    %125 = arith.mulf %122, %107 : vector<1x64xf32>
    %126 = arith.mulf %121, %123 : vector<1x64xf32>
    %127 = arith.addf %125, %126 : vector<1x64xf32>
    %128 = math.tanh %127 : vector<1x64xf32>
    %129 = arith.mulf %124, %128 : vector<1x64xf32>
    %130 = vector.extract_strided_slice %129 {offsets = [0, 32], sizes = [1, 32], strides = [1, 1]} : vector<1x64xf32> to vector<1x32xf32>
    %c1_i32_42 = arith.constant 1 : i32
    %131 = arith.subi %c4_i32, %c1_i32_42 : i32
    %132 = arith.index_cast %131 : i32 to index
    %c0_43 = arith.constant 0 : index
    %133 = vector.load %arg6[%132, %c0_43] : memref<8x32xf32, #tpu.memory_space<vmem>>, vector<1x32xf32>
    tpu.vector_store %arg6[%132, %c0_43], %130 {strides = array<i32>} : memref<8x32xf32, #tpu.memory_space<vmem>>, vector<1x32xf32>,
    %c5_i32 = arith.constant 5 : i32
    %134 = arith.index_cast %c5_i32 : i32 to index
    %c0_44 = arith.constant 0 : index
    %135 = vector.load %arg7[%134, %c0_44] : memref<8x256xf32, #tpu.memory_space<vmem>>, vector<1x256xf32>
    %cst_45 = arith.constant dense<0.000000e+00> : vector<1x256xf32>
    %136 = tpu.matmul %129, %28, %cst_45 {dimension_numbers = #tpu.dot_dimension_numbers<[1], [0], [0], [1], [0, 0, 1, 1], [], []>} : vector<1x64xf32>, vector<64x256xf32>, vector<1x256xf32> -> vector<1x256xf32>
    %137 = arith.addf %135, %136 : vector<1x256xf32>
    %138 = math.tanh %137 : vector<1x256xf32>
    %139 = arith.mulf %37, %138 : vector<1x256xf32>
    %140 = arith.addf %139, %40 : vector<1x256xf32>
    %141 = vector.extract_strided_slice %140 {offsets = [0, 0], sizes = [1, 64], strides = [1, 1]} : vector<1x256xf32> to vector<1x64xf32>
    %142 = vector.extract_strided_slice %140 {offsets = [0, 64], sizes = [1, 64], strides = [1, 1]} : vector<1x256xf32> to vector<1x64xf32>
    %143 = vector.extract_strided_slice %140 {offsets = [0, 128], sizes = [1, 64], strides = [1, 1]} : vector<1x256xf32> to vector<1x64xf32>
    %144 = vector.extract_strided_slice %140 {offsets = [0, 192], sizes = [1, 64], strides = [1, 1]} : vector<1x256xf32> to vector<1x64xf32>
    %145 = arith.mulf %142, %127 : vector<1x64xf32>
    %146 = arith.mulf %141, %143 : vector<1x64xf32>
    %147 = arith.addf %145, %146 : vector<1x64xf32>
    %148 = math.tanh %147 : vector<1x64xf32>
    %149 = arith.mulf %144, %148 : vector<1x64xf32>
    %150 = vector.extract_strided_slice %149 {offsets = [0, 32], sizes = [1, 32], strides = [1, 1]} : vector<1x64xf32> to vector<1x32xf32>
    %c1_i32_46 = arith.constant 1 : i32
    %151 = arith.subi %c5_i32, %c1_i32_46 : i32
    %152 = arith.index_cast %151 : i32 to index
    %c0_47 = arith.constant 0 : index
    %153 = vector.load %arg6[%152, %c0_47] : memref<8x32xf32, #tpu.memory_space<vmem>>, vector<1x32xf32>
    tpu.vector_store %arg6[%152, %c0_47], %150 {strides = array<i32>} : memref<8x32xf32, #tpu.memory_space<vmem>>, vector<1x32xf32>,
    %c6_i32 = arith.constant 6 : i32
    %154 = arith.index_cast %c6_i32 : i32 to index
    %c0_48 = arith.constant 0 : index
    %155 = vector.load %arg7[%154, %c0_48] : memref<8x256xf32, #tpu.memory_space<vmem>>, vector<1x256xf32>
    %cst_49 = arith.constant dense<0.000000e+00> : vector<1x256xf32>
    %156 = tpu.matmul %149, %28, %cst_49 {dimension_numbers = #tpu.dot_dimension_numbers<[1], [0], [0], [1], [0, 0, 1, 1], [], []>} : vector<1x64xf32>, vector<64x256xf32>, vector<1x256xf32> -> vector<1x256xf32>
    %157 = arith.addf %155, %156 : vector<1x256xf32>
    %158 = math.tanh %157 : vector<1x256xf32>
    %159 = arith.mulf %37, %158 : vector<1x256xf32>
    %160 = arith.addf %159, %40 : vector<1x256xf32>
    %161 = vector.extract_strided_slice %160 {offsets = [0, 0], sizes = [1, 64], strides = [1, 1]} : vector<1x256xf32> to vector<1x64xf32>
    %162 = vector.extract_strided_slice %160 {offsets = [0, 64], sizes = [1, 64], strides = [1, 1]} : vector<1x256xf32> to vector<1x64xf32>
    %163 = vector.extract_strided_slice %160 {offsets = [0, 128], sizes = [1, 64], strides = [1, 1]} : vector<1x256xf32> to vector<1x64xf32>
    %164 = vector.extract_strided_slice %160 {offsets = [0, 192], sizes = [1, 64], strides = [1, 1]} : vector<1x256xf32> to vector<1x64xf32>
    %165 = arith.mulf %162, %147 : vector<1x64xf32>
    %166 = arith.mulf %161, %163 : vector<1x64xf32>
    %167 = arith.addf %165, %166 : vector<1x64xf32>
    %168 = math.tanh %167 : vector<1x64xf32>
    %169 = arith.mulf %164, %168 : vector<1x64xf32>
    %170 = vector.extract_strided_slice %169 {offsets = [0, 32], sizes = [1, 32], strides = [1, 1]} : vector<1x64xf32> to vector<1x32xf32>
    %c1_i32_50 = arith.constant 1 : i32
    %171 = arith.subi %c6_i32, %c1_i32_50 : i32
    %172 = arith.index_cast %171 : i32 to index
    %c0_51 = arith.constant 0 : index
    %173 = vector.load %arg6[%172, %c0_51] : memref<8x32xf32, #tpu.memory_space<vmem>>, vector<1x32xf32>
    tpu.vector_store %arg6[%172, %c0_51], %170 {strides = array<i32>} : memref<8x32xf32, #tpu.memory_space<vmem>>, vector<1x32xf32>,
    %c7_i32 = arith.constant 7 : i32
    %174 = arith.index_cast %c7_i32 : i32 to index
    %c0_52 = arith.constant 0 : index
    %175 = vector.load %arg7[%174, %c0_52] : memref<8x256xf32, #tpu.memory_space<vmem>>, vector<1x256xf32>
    %cst_53 = arith.constant dense<0.000000e+00> : vector<1x256xf32>
    %176 = tpu.matmul %169, %28, %cst_53 {dimension_numbers = #tpu.dot_dimension_numbers<[1], [0], [0], [1], [0, 0, 1, 1], [], []>} : vector<1x64xf32>, vector<64x256xf32>, vector<1x256xf32> -> vector<1x256xf32>
    %177 = arith.addf %175, %176 : vector<1x256xf32>
    %178 = math.tanh %177 : vector<1x256xf32>
    %179 = arith.mulf %37, %178 : vector<1x256xf32>
    %180 = arith.addf %179, %40 : vector<1x256xf32>
    %181 = vector.extract_strided_slice %180 {offsets = [0, 0], sizes = [1, 64], strides = [1, 1]} : vector<1x256xf32> to vector<1x64xf32>
    %182 = vector.extract_strided_slice %180 {offsets = [0, 64], sizes = [1, 64], strides = [1, 1]} : vector<1x256xf32> to vector<1x64xf32>
    %183 = vector.extract_strided_slice %180 {offsets = [0, 128], sizes = [1, 64], strides = [1, 1]} : vector<1x256xf32> to vector<1x64xf32>
    %184 = vector.extract_strided_slice %180 {offsets = [0, 192], sizes = [1, 64], strides = [1, 1]} : vector<1x256xf32> to vector<1x64xf32>
    %185 = arith.mulf %182, %167 : vector<1x64xf32>
    %186 = arith.mulf %181, %183 : vector<1x64xf32>
    %187 = arith.addf %185, %186 : vector<1x64xf32>
    %188 = math.tanh %187 : vector<1x64xf32>
    %189 = arith.mulf %184, %188 : vector<1x64xf32>
    %190 = vector.extract_strided_slice %189 {offsets = [0, 32], sizes = [1, 32], strides = [1, 1]} : vector<1x64xf32> to vector<1x32xf32>
    %c1_i32_54 = arith.constant 1 : i32
    %191 = arith.subi %c7_i32, %c1_i32_54 : i32
    %192 = arith.index_cast %191 : i32 to index
    %c0_55 = arith.constant 0 : index
    %193 = vector.load %arg6[%192, %c0_55] : memref<8x32xf32, #tpu.memory_space<vmem>>, vector<1x32xf32>
    tpu.vector_store %arg6[%192, %c0_55], %190 {strides = array<i32>} : memref<8x32xf32, #tpu.memory_space<vmem>>, vector<1x32xf32>,
    %c7_i32_56 = arith.constant 7 : i32
    %c7 = arith.constant 7 : index
    %c0_57 = arith.constant 0 : index
    %194 = vector.load %arg7[%c7, %c0_57] : memref<8x256xf32, #tpu.memory_space<vmem>>, vector<1x256xf32>
    %cst_58 = arith.constant dense<0.000000e+00> : vector<1x256xf32>
    %195 = tpu.matmul %189, %28, %cst_58 {dimension_numbers = #tpu.dot_dimension_numbers<[1], [0], [0], [1], [0, 0, 1, 1], [], []>} : vector<1x64xf32>, vector<64x256xf32>, vector<1x256xf32> -> vector<1x256xf32>
    %196 = arith.addf %194, %195 : vector<1x256xf32>
    %197 = math.tanh %196 : vector<1x256xf32>
    %198 = arith.mulf %37, %197 : vector<1x256xf32>
    %199 = arith.addf %198, %40 : vector<1x256xf32>
    %200 = vector.extract_strided_slice %199 {offsets = [0, 0], sizes = [1, 64], strides = [1, 1]} : vector<1x256xf32> to vector<1x64xf32>
    %201 = vector.extract_strided_slice %199 {offsets = [0, 64], sizes = [1, 64], strides = [1, 1]} : vector<1x256xf32> to vector<1x64xf32>
    %202 = vector.extract_strided_slice %199 {offsets = [0, 128], sizes = [1, 64], strides = [1, 1]} : vector<1x256xf32> to vector<1x64xf32>
    %203 = vector.extract_strided_slice %199 {offsets = [0, 192], sizes = [1, 64], strides = [1, 1]} : vector<1x256xf32> to vector<1x64xf32>
    %204 = arith.mulf %201, %187 : vector<1x64xf32>
    %205 = arith.mulf %200, %202 : vector<1x64xf32>
    %206 = arith.addf %204, %205 : vector<1x64xf32>
    %207 = math.tanh %206 : vector<1x64xf32>
    %208 = arith.mulf %203, %207 : vector<1x64xf32>
    %209 = vector.extract_strided_slice %208 {offsets = [0, 32], sizes = [1, 32], strides = [1, 1]} : vector<1x64xf32> to vector<1x32xf32>
    %c7_59 = arith.constant 7 : index
    %c0_60 = arith.constant 0 : index
    %210 = vector.load %arg6[%c7_59, %c0_60] : memref<8x32xf32, #tpu.memory_space<vmem>>, vector<1x32xf32>
    tpu.vector_store %arg6[%c7_59, %c0_60], %209 {strides = array<i32>} : memref<8x32xf32, #tpu.memory_space<vmem>>, vector<1x32xf32>,
    %c0_61 = arith.constant 0 : index
    %c0_62 = arith.constant 0 : index
    %211 = vector.load %arg6[%c0_61, %c0_62] : memref<8x32xf32, #tpu.memory_space<vmem>>, vector<8x32xf32>
    %c0_63 = arith.constant 0 : index
    %c0_64 = arith.constant 0 : index
    %212 = vector.load %arg4[%c0_63, %c0_64] : memref<35x64xf32, #tpu.memory_space<vmem>>, vector<32x64xf32>
    %cst_65 = arith.constant dense<0.000000e+00> : vector<8x64xf32>
    %213 = tpu.matmul %211, %212, %cst_65 {dimension_numbers = #tpu.dot_dimension_numbers<[1], [0], [0], [1], [0, 0, 1, 1], [], []>} : vector<8x32xf32>, vector<32x64xf32>, vector<8x64xf32> -> vector<8x64xf32>
    %c32_66 = arith.constant 32 : index
    %c0_67 = arith.constant 0 : index
    %214 = vector.load %arg4[%c32_66, %c0_67] : memref<35x64xf32, #tpu.memory_space<vmem>>, vector<1x64xf32>
    %215 = vector.broadcast %214 : vector<1x64xf32> to vector<8x64xf32>
    %216 = arith.addf %213, %215 : vector<8x64xf32>
    %cst_68 = arith.constant 0.000000e+00 : f32
    %217 = vector.broadcast %cst_68 : f32 to vector<8x64xf32>
    %218 = arith.maximumf %216, %217 : vector<8x64xf32>
    %c33 = arith.constant 33 : index
    %c0_69 = arith.constant 0 : index
    %219 = vector.load %arg4[%c33, %c0_69] : memref<35x64xf32, #tpu.memory_space<vmem>>, vector<1x64xf32>
    %220 = tpu.transpose %218, [1, 0] : vector<8x64xf32> -> vector<64x8xf32>
    %cst_70 = arith.constant dense<0.000000e+00> : vector<1x8xf32>
    %221 = tpu.matmul %219, %220, %cst_70 {dimension_numbers = #tpu.dot_dimension_numbers<[1], [0], [0], [1], [0, 0, 1, 1], [], []>} : vector<1x64xf32>, vector<64x8xf32>, vector<1x8xf32> -> vector<1x8xf32>
    %c34 = arith.constant 34 : index
    %c0_71 = arith.constant 0 : index
    %222 = vector.load %arg4[%c34, %c0_71] : memref<35x64xf32, #tpu.memory_space<vmem>>, vector<1x1xf32>
    %223 = vector.broadcast %222 : vector<1x1xf32> to vector<1x8xf32>
    %224 = arith.addf %221, %223 : vector<1x8xf32>
    %cst_72 = arith.constant 0.000000e+00 : f32
    %225 = vector.broadcast %cst_72 : f32 to vector<1x8xf32>
    %226 = arith.maximumf %224, %225 : vector<1x8xf32>
    %c0_73 = arith.constant 0 : index
    %c0_74 = arith.constant 0 : index
    %227 = vector.load %arg5[%c0_73, %c0_74] : memref<1x8xf32, #tpu.memory_space<vmem>>, vector<1x8xf32>
    tpu.vector_store %arg5[%c0_73, %c0_74], %226 {strides = array<i32>} : memref<1x8xf32, #tpu.memory_space<vmem>>, vector<1x8xf32>,
    return
  }
}

</mosaic_0001>

<bundles_post_ra>
// kernel: tpu_custom_call.1
= control target key start
LH: loop header
LB: loop body
LE: loop exit
PB: predicated region body
PF: predicated region fallthrough
CT: control target
= control target key end

     0   :  { %10 = vsyncpa [#allocation5], 0  ;;  %s2591_s0 = inlined_call_operand.vmem [shape: f32[8,53], index: 0, kind: input, shape index: {}]   ;;  %s2592_s1 = inlined_call_operand.hbm [shape: f32[54,128], index: 1, kind: input, shape index: {}]   ;;  %s2593_s2 = inlined_call_operand.vmem [shape: f32[97,256], index: 2, kind: input, shape index: {}]   ;;  %s2594_s3 = inlined_call_operand.vmem [shape: f32[162,32], index: 3, kind: input, shape index: {}]   ;;  %s2595_s4 = inlined_call_operand.hbm [shape: f32[35,64], index: 4, kind: input, shape index: {}]   ;;  %s2596_s5 = inlined_call_operand.hbm [shape: f32[1,8], index: 5, kind: output, shape index: {}]  }
   0x1   :  { %11 = vsyncpa [#allocation8], 0 }
   0x2   :  { %12 = vsyncpa [#allocation6], 0  ;;  %s2110_s18 = smov [#allocation4]   ;;  %s2038_s22 = scalar_lea.hbm %s2592_s1, 896 }
   0x3   :  { %s20_s19 = sshll.u32 %s2110_s18, 4  ;;  %p2039_p0 = scmp.ne.s32.totalorder %s2592_s1, %s2038_s22  ;;  %s21_s19 = int_to_ptr.vmem [resolvable:$true] %s20_s19 }
   0x4   :  { %p2042_p1 = scmp.lt.u32.totalorder %s2038_s22, %s2592_s1 }
   0x6   :  { %p2044_p2 = pnand %p2042_p1, %p2039_p0 }
   0x8   :  { %2047 = shalt.err (!%p2044_p2)
}
   0x9   :  { %s2048_s27 = scalar_lea.vmem %s21_s19, 896  ;;  %p2053_p4 = scmp.lt.s32.totalorder %s21_s19, %s21_s19 }
   0xa   :  { %p2049_p3 = scmp.ne.s32.totalorder %s21_s19, %s2048_s27  ;;  %p2054_p5 = scmp.lt.s32.totalorder %s2048_s27, %s2048_s27 }
   0xc   :  { %p2055_p6 = por %p2054_p5, %p2053_p4 }
   0xe   :  { %p2056_p7 = pnand %p2055_p6, %p2049_p3 }
  0x10   :  { %2059 = shalt.err (!%p2056_p7)
}
  0x11   :  { %s2111_s28 = smov 128   ;;  %s2112_s29 = smov 8  }
  0x12   :  { %26 = dma.hbm_to_vmem [thread:$0]  %s2592_s1, 896, %s21_s19, [#allocation5], %s2111_s28, %s2111_s28, %s2112_s29  }
  0x13   :  { %s2113_s7 = smov [#allocation7]   ;;  %s2060_s11 = scalar_lea.hbm %s2595_s4, 640 }
  0x14   :  { %s36_s8 = sshll.u32 %s2113_s7, 4  ;;  %p2061_p8 = scmp.ne.s32.totalorder %s2595_s4, %s2060_s11  ;;  %s37_s8 = int_to_ptr.vmem [resolvable:$true] %s36_s8 }
  0x15   :  { %p2064_p9 = scmp.lt.u32.totalorder %s2060_s11, %s2595_s4 }
  0x17   :  { %p2066_p10 = pnand %p2064_p9, %p2061_p8 }
  0x19   :  { %2069 = shalt.err (!%p2066_p10)
}
  0x1a   :  { %s2070_s16 = scalar_lea.vmem %s37_s8, 640  ;;  %p2075_p12 = scmp.lt.s32.totalorder %s37_s8, %s37_s8 }
  0x1b   :  { %p2071_p11 = scmp.ne.s32.totalorder %s37_s8, %s2070_s16  ;;  %p2076_p13 = scmp.lt.s32.totalorder %s2070_s16, %s2070_s16 }
  0x1d   :  { %p2077_p0 = por %p2076_p13, %p2075_p12 }
  0x1f   :  { %p2078_p1 = pnand %p2077_p0, %p2071_p11 }
  0x21   :  { %2081 = shalt.err (!%p2078_p1)
}
  0x22   :  { %42 = dma.hbm_to_vmem [thread:$0]  %s2595_s4, 640, %s37_s8, [#allocation8], %s2111_s28, %s2111_s28, %s2112_s29  }
  0x23   :  { %2104 = dma.done.wait [#allocation5], 896  }
  0x24   :  { %2105 = vsyncadd [#allocation5], 4294966400 }
  0x25   :  { %2106 = dma.done.wait [#allocation8], 640  }
  0x26   :  { %2107 = vsyncadd [#allocation8], 4294966656  ;;  %v2114_v0 = vmov 0.0|0.0   ;;  %vm2115_vm0 = vmmov 0   ;;  %v2116_v1 = vmov 0.0   ;;  %v50_v2 = vld [vmem:[#allocation4] sm:$0xff] }
  0x27   :  { %1807 = vmatprep.subr.bf16.mxu0 %v2114_v0  ;;  %1742 = vmatprep.mubr.msk.f32.mxu0 %vm2115_vm0, %v2116_v1  ;;  %v51_v3 = vld [vmem:[#allocation4 + $0x8] sm:$0xff]  ;;  %v52_v4 = vld [vmem:[#allocation4 + $0x10] sm:$0xff]  ;;  %v53_v6 = vld [vmem:[#allocation4 + $0x18] sm:$0xff]  ;;  %vm66_vm1 = vcmask 1044480   ;;  %vm62_vm2 = vcmask 433152   ;;  %vm242_vm3 = vcmask 261120  }
  0x28   :  { %1816 = vmatprep.subr.bf16.mxu1 %v2114_v0  ;;  %1777 = vmatprep.mubr.msk.f32.mxu1 %vm2115_vm0, %v2116_v1  ;;  %v1808_v5 = vpack.c.bf16 %v51_v3, %v50_v2  ;;  %v141_v7 = vld [vmem:[%s2594_s3] sm:$0xff]  ;;  %v1811_v8 = vpack.c.bf16 %v53_v6, %v52_v4  ;;  %v142_v9 = vld [vmem:[%s2594_s3 + $0x8] sm:$0xff]  ;;  %v143_v10 = vld [vmem:[%s2594_s3 + $0x10] sm:$0xff]  ;;  %s2118_s30 = smov 64   ;;  %vm475_vm5 = vcmask 523264   ;;  %vm602_vm6 = vcmask 253952  }
  0x29   :  { %v144_v11 = vld [vmem:[%s2594_s3 + $0x18] sm:$0xff]  ;;  %v55_v13 = vld [vmem:[#allocation4 + $0x28] sm:$0xff]  ;;  %v1817_v14 = vpack.c.bf16 %v142_v9, %v141_v7  ;;  %v146_v18 = vld [vmem:[%s2594_s3 + $0x28] sm:$0xff]  ;;  %s2122_s28 = smov [#allocation9]   ;;  %vm1653_vm7 = vcmask 57344  }
  0x2a   :  { %1809 = vmatpush3.bf16.msra.mxu0 %v1808_v5  ;;  %v54_v12 = vld [vmem:[#allocation4 + $0x20] sm:$0xff]  ;;  %v1820_v15 = vpack.c.bf16 %v144_v11, %v143_v10  ;;  %v145_v17 = vld [vmem:[%s2594_s3 + $0x20] sm:$0xff]  ;;  %v147_v20 = vld [vmem:[%s2594_s3 + $0x30] sm:$0xff]  ;;  %s1661_s29 = sshll.u32 %s2122_s28, 4  ;;  %s1662_s29 = int_to_ptr.vmem [resolvable:$true] %s1661_s29 }
  0x2b   :  { %1810 = vmatprep.subr.bf16.mxu0 %v2114_v0  ;;  %1818 = vmatpush3.bf16.msra.mxu1 %v1817_v14  ;;  %v1814_v16 = vpack.c.bf16 %v55_v13, %v54_v12  ;;  %v1823_v19 = vpack.c.bf16 %v146_v18, %v145_v17  ;;  %v148_v21 = vld [vmem:[%s2594_s3 + $0x38] sm:$0xff]  ;;  %v56_v22 = vld [vmem:[#allocation4 + $0x30] sm:$0x1f]  ;;  %v49_v23 = vld [vmem:[%s2591_s0] sm:$0xff]  ;;  %s2086_s6 = scalar_lea.vmem %s1662_s29, 32  ;;  %p2087_p3 = scmp.lt.s32.totalorder %s1662_s29, %s1662_s29 }
  0x2c   :  { %1819 = vmatprep.subr.bf16.mxu1 %v2114_v0  ;;  %v1826_v24 = vpack.c.bf16 %v148_v21, %v147_v20  ;;  %v149_v25 = vld [vmem:[%s2594_s3 + $0x40] sm:$0xff]  ;;  %v150_v26 = vld [vmem:[%s2594_s3 + $0x48] sm:$0xff]  ;;  %v151_v28 = vld [vmem:[%s2594_s3 + $0x50] sm:$0xff] }
  0x2d   :  { %v1829_v27 = vpack.c.bf16 %v150_v26, %v149_v25  ;;  %v152_v29 = vld [vmem:[%s2594_s3 + $0x58] sm:$0xff]  ;;  %v153_v31 = vld [vmem:[%s2594_s3 + $0x60] sm:$0xff]  ;;  %v154_v32 = vld [vmem:[%s2594_s3 + $0x68] sm:$0xff] }
  0x2e   :  { %1812 = vmatpush3.bf16.msra.mxu0 %v1811_v8  ;;  %v1832_v30 = vpack.c.bf16 %v152_v29, %v151_v28  ;;  %v1835_v33 = vpack.c.bf16 %v154_v32, %v153_v31  ;;  %v155_v34 = vld [vmem:[%s2594_s3 + $0x70] sm:$0xff]  ;;  %v156_v35 = vld [vmem:[%s2594_s3 + $0x78] sm:$0xff]  ;;  %v233_v37 = vld [vmem:[%s2594_s3 + $0x81] sm:$0xff]  ;;  %v328_v8 = vlaneseq }
  0x2f   :  { %1813 = vmatprep.subr.bf16.mxu0 %v2114_v0  ;;  %1821 = vmatpush3.bf16.msra.mxu1 %v1820_v15  ;;  %v1838_v36 = vpack.c.bf16 %v156_v35, %v155_v34  ;;  %v234_v38 = vld [vmem:[%s2594_s3 + $0x89] sm:$0xff]  ;;  %v235_v45 = vld [vmem:[%s2594_s3 + $0x91] sm:$0xff]  ;;  %v236_v46 = vld [vmem:[%s2594_s3 + $0x99] sm:$0xff] }
  0x30   :  { %1822 = vmatprep.subr.bf16.mxu1 %v2114_v0  ;;  %v1841_v39 = vpack.c.bf16 %v234_v38, %v233_v37  ;;  %v1671_v40 = vld [vmem:[#allocation4 + $0x35] ss:$0 sm:$0xff]  ;;  %v1844_v47 = vpack.c.bf16 %v236_v46, %v235_v45  ;;  %v320_v49 = vld [vmem:[%s2593_s2 + $0x18] sm:$0xff]  ;;  %v1674_v51 = vld [vmem:[%s2594_s3 + $0x80] ss:$0 sm:$0xff]  ;;  %v2295_v9 = vshrl.u32 %v328_v8, 7 }
  0x31   :  { %v318_v48 = vld [vmem:[%s2593_s2 + $0x8] sm:$0xff]  ;;  %v317_v52 = vld [vmem:[%s2593_s2] sm:$0xff]  ;;  %v319_v53 = vld [vmem:[%s2593_s2 + $0x10] sm:$0xff] }
  0x32   :  { %1815 = vmatpush3.bf16.msra.mxu0 %v1814_v16  ;;  %v1846_v50 = vpack.c.bf16 %v320_v49, %v318_v48  ;;  %v1848_v57 = vpack.c.bf16 %v319_v53, %v317_v52  ;;  %v322_v59 = vld [vmem:[%s2593_s2 + $0x28] sm:$0xff]  ;;  %v324_v60 = vld [vmem:[%s2593_s2 + $0x38] sm:$0xff]  ;;  %v321_v62 = vld [vmem:[%s2593_s2 + $0x20] sm:$0xff]  ;;  %v2298_v10 = vsub.s32 0, %v2295_v9  ;;  %v2304_v12 = vsub.s32 1, %v2295_v9 }
  0x33   :  { %1740 = vmatprep.subr.mxu0 %v2116_v1  ;;  %1824 = vmatpush3.bf16.msra.mxu1 %v1823_v19  ;;  %v1850_v61 = vpack.c.bf16 %v324_v60, %v322_v59  ;;  %v323_v63 = vld [vmem:[%s2593_s2 + $0x30] sm:$0xff]  ;;  %v1675_v3 = vld [vmem:[%s2594_s3 + $0xa1] ss:$0 sm:$0xff]  ;;  %v1677_v11 = vld [vmem:[%s2593_s2 + $0xc0] ss:$8 sm:$0x3] }
  0x34   :  { %1825 = vmatprep.subr.bf16.mxu1 %v2114_v0  ;;  %v1852_v2 = vpack.c.bf16 %v323_v63, %v321_v62  ;;  %v331_v13 = vrot.slane %v1677_v11, %v2298_v10  ;;  %v335_v14 = vrot.slane %v1677_v11, %v2304_v12  ;;  %v431_v19 = vand.u32 127, %v328_v8  ;;  %v415_v34 = vld [vmem:[%s2593_s2 + $0x48] sm:$0xff]  ;;  %v417_v35 = vld [vmem:[%s2593_s2 + $0x58] sm:$0xff]  ;;  %v416_v38 = vld [vmem:[%s2593_s2 + $0x50] sm:$0xff] }
  0x35   :  { %v2327_v37 = vpack.c.bf16 %v417_v35, %v415_v34  ;;  %v423_v45 = vld [vmem:[%s2593_s2 + $0x88] sm:$0xff]  ;;  %v425_v46 = vld [vmem:[%s2593_s2 + $0x98] sm:$0xff]  ;;  %v422_v49 = vld [vmem:[%s2593_s2 + $0x80] sm:$0xff]  ;;  %v2119_v63 = vmov 1966171168  }
  0x36   :  { %1741 = vmatpush3.msk.msra.mxu0 %vm66_vm1, %v56_v22  ;;  %v432_v21 = vadd.s32 128, %v431_v19  ;;  %v2361_v48 = vpack.c.bf16 %v425_v46, %v423_v45  ;;  %v429_v52 = vld [vmem:[%s2593_s2 + $0xb8] sm:$0xff] }
  0x37   :  { %1743 = vmatmul.mubr.msk.f32.vlgmr.msra.gmra.mrb[0].mxu0 %vm62_vm2, %v49_v23  ;;  %1840 = vmatprep.subr.bf16.mxu0 %v2114_v0  ;;  %v2117_v23 = vmov 0.5  }
  0x38   :  { %1788 = vmatprep.mubr.msk.f32.mxu0 %vm2115_vm0, %v2116_v1  ;;  %1827 = vmatpush3.bf16.msra.mxu1 %v1826_v24  ;;  %vm436_vm4 = vcmp.lt.s32.totalorder %v432_v21, 192 }
  0x39   :  { %1828 = vmatprep.subr.bf16.mxu1 %v2114_v0  ;;  %1842 = vmatpush3.bf16.msra.mxu0 %v1841_v39  ;;  %v2308_v24 = vsel %vm436_vm4, 1.0, %v2117_v23  ;;  %v419_v39 = vld [vmem:[%s2593_s2 + $0x68] sm:$0xff] }
  0x3a   :  { %1843 = vmatprep.subr.bf16.mxu0 %v2114_v0 }
  0x3c   :  { %1830 = vmatpush3.bf16.msra.mxu1 %v1829_v27  ;;  %v2312_v27 = vsel %vm436_vm4, 0.0, %v2117_v23 }
  0x3d   :  { %1831 = vmatprep.subr.bf16.mxu1 %v2114_v0  ;;  %1845 = vmatpush3.bf16.msra.mxu0 %v1844_v47 }
  0x3e   :  { %1847 = vmatprep.subr.bf16.mxu0 %v1846_v50  ;;  %v424_v50 = vld [vmem:[%s2593_s2 + $0x90] sm:$0xff] }
  0x3f   :  { %v2377_v53 = vpack.c.bf16 %v424_v50, %v422_v49 }
  0x40   :  { %1833 = vmatpush3.bf16.msra.mxu1 %v1832_v30 }
  0x41   :  { %1834 = vmatprep.subr.bf16.mxu1 %v2114_v0 }
  0x44   :  { %1836 = vmatpush3.bf16.msra.mxu1 %v1835_v33 }
  0x45   :  { %1837 = vmatprep.subr.bf16.mxu1 %v2114_v0 }
  0x48   :  { %1839 = vmatpush3.bf16.msra.mxu1 %v1838_v36  ;;  %v414_v36 = vld [vmem:[%s2593_s2 + $0x40] sm:$0xff] }
  0x49   :  { %1871 = vmatprep.subr.bf16.mxu1 %v2327_v37 }
 0x10a   :  { %v136_v41 = vpop.f32.mrb[0].mxu0 }
 0x10b   :  { %v137_v42 = vadd.f32 %v1671_v40, %v136_v41  ;;  %v1744_v43 = vpop.f32.mrb[1].mxu0  ;;  %v421_v40 = vld [vmem:[%s2593_s2 + $0x78] sm:$0xff]  ;;  %v2338_v41 = vpack.c.bf16 %v416_v38, %v414_v36 }
 0x10c   :  { %v418_v43 = vld [vmem:[%s2593_s2 + $0x60] sm:$0xff] }
 0x10d   :  { %v140_v44 = vmax.f32 %v137_v42, 0.0  ;;  %v2340_v42 = vpack.c.bf16 %v421_v40, %v419_v39 }
 0x10f   :  { %1778 = vmatmul.mubr.f32.vlgmr.msra.gmra.mrb[0].mxu1 %v140_v44  ;;  %v420_v44 = vld [vmem:[%s2593_s2 + $0x70] sm:$0xff] }
 0x110   :  { %674 = vmatprep.mubr.f32.mxu1 %v2116_v1  ;;  %v2357_v47 = vpack.c.bf16 %v420_v44, %v418_v43  ;;  %1873 = vmatpush1.bf16.msra.mxu1 %v2338_v41 }
 0x111   :  { %1875 = vmatprep.subr.bf16.mxu1 %v2340_v42 }
 0x114   :  { %1877 = vmatpush1.bf16.msra.mxu1 %v2357_v47 }
 0x115   :  { %1879 = vmatprep.subr.bf16.mxu1 %v2361_v48 }
 0x118   :  { %1881 = vmatpush1.bf16.msra.mxu1 %v2377_v53 }
 0x1e2   :  { %v228_v54 = vpop.f32.mrb[0].mxu1 }
 0x1e3   :  { %v229_v55 = vadd.f32 %v1674_v51, %v228_v54  ;;  %v1779_v56 = vpop.f32.mrb[1].mxu1  ;;  %v427_v51 = vld [vmem:[%s2593_s2 + $0xa8] sm:$0xff] }
 0x1e4   :  { %v2381_v54 = vpack.c.bf16 %v429_v52, %v427_v51  ;;  %v428_v56 = vld [vmem:[%s2593_s2 + $0xb0] sm:$0xff] }
 0x1e5   :  { %v232_v58 = vmax.f32 %v229_v55, 0.0  ;;  %v426_v55 = vld [vmem:[%s2593_s2 + $0xa0] sm:$0xff]  ;;  %s2120_s2 = smov 32  }
 0x1e6   :  { %1883 = vmatprep.subr.bf16.mxu1 %v2381_v54 }
 0x1e7   :  { %1789 = vmatmul.mubr.msk.f32.vlgmr.msra.gmra.mrb[2].mxu0 %vm242_vm3, %v232_v58  ;;  %v2392_v58 = vpack.c.bf16 %v428_v56, %v426_v55 }
 0x1e8   :  { %1849 = vmatpush1.bf16.msra.mxu0 %v1848_v57  ;;  %405 = vmatprep.mubr.f32.mxu0 %v2116_v1 }
 0x1e9   :  { %1851 = vmatprep.subr.bf16.mxu0 %v1850_v61  ;;  %1885 = vmatpush1.bf16.msra.mxu1 %v2392_v58 }
 0x1ea   :  { %1903 = vmatprep.subr.bf16.mxu1 %v2327_v37 }
 0x1ec   :  { %1853 = vmatpush1.bf16.msra.mxu0 %v1852_v2  ;;  %v554_v2 = vunpack.c.l.s4 %v2119_v63 }
 0x1ed   :  { %1855 = vmatprep.subr.bf16.mxu0 %v2327_v37 }
 0x2ba   :  { %v312_v4 = vpop.f32.mrb[2].mxu0 }
 0x2bb   :  { %v313_v5 = vadd.f32 %v1675_v3, %v312_v4  ;;  %v1790_v6 = vpop.f32.mrb[3].mxu0  ;;  %v555_v3 = vunpack.c.0.s8 %v554_v2 }
 0x2bd   :  { %v316_v7 = vmax.f32 %v313_v5, 0.0  ;;  %v2414_v4 = vsub.s32 %v555_v3, %v2295_v9 }
 0x2bf   :  { %1678 = vmatmul.mubr.msk.f32.vlgmr.msra.gmra.mrb[4].mxu0 %vm242_vm3, %v316_v7 }
 0x2c0   :  { %543 = vmatprep.mubr.f32.mxu0 %v2116_v1  ;;  %1857 = vmatpush1.bf16.msra.mxu0 %v2338_v41 }
 0x2c1   :  { %1859 = vmatprep.subr.bf16.mxu0 %v2340_v42 }
 0x2c4   :  { %1861 = vmatpush1.bf16.msra.mxu0 %v2357_v47 }
 0x2c5   :  { %1863 = vmatprep.subr.bf16.mxu0 %v2361_v48 }
 0x2c8   :  { %1865 = vmatpush1.bf16.msra.mxu0 %v2377_v53 }
 0x2c9   :  { %1867 = vmatprep.subr.bf16.mxu0 %v2381_v54 }
 0x2cc   :  { %1869 = vmatpush1.bf16.msra.mxu0 %v2392_v58 }
 0x2cd   :  { %1887 = vmatprep.subr.bf16.mxu0 %v2327_v37 }
 0x392   :  { %v407_v15 = vpop.f32.mrb[4].mxu0 }
 0x393   :  { %v408_v16 = vadd.f32 %v407_v15, %v331_v13  ;;  %v409_v17 = vpop.f32.mrb[5].mxu0 }
 0x394   :  { %v410_v18 = vadd.f32 %v409_v17, %v335_v14 }
 0x395   :  { %412 = vst [vmem:[#allocation3] sm:$0xff] %v408_v16 }
 0x396   :  { %413 = vst [vmem:[#allocation3 + $0x8] sm:$0xff] %v410_v18 }
 0x39d   :  { %v443_v20 = vld [vmem:[#allocation3] ss:$8 sm:$0x3]  ;;  %v474_v13 = vld [vmem:[#allocation3 + $0x1] ss:$8 sm:$0x3] }
 0x39e   :  { %2002 = vtanh.f32 %v443_v20  ;;  %v605_v36 = vld [vmem:[#allocation3 + $0x2] ss:$8 sm:$0x3]  ;;  %v731_v3 = vld [vmem:[#allocation3 + $0x3] ss:$8 sm:$0x3] }
 0x3a8   :  { %v2003_v22 = vpop.eup %2002 }
 0x3a9   :  { %v449_v25 = vrot.slane %v2003_v22, %v2298_v10  ;;  %v453_v26 = vrot.slane %v2003_v22, %v2304_v12 }
 0x3ab   :  { %v456_v28 = vmul.f32 0.5, %v449_v25  ;;  %v457_v29 = vmul.f32 %v453_v26, %v2308_v24 }
 0x3ad   :  { %v458_v30 = vadd.f32 0.5, %v456_v28  ;;  %v459_v31 = vadd.f32 %v457_v29, %v2312_v27 }
 0x3af   :  { %v460_v32 = vmul.f32 %v459_v31, %v458_v30 }
 0x3b1   :  { %v472_v33 = vsel %vm242_vm3, %v460_v32, 0.0  ;;  %2004 = vtanh.f32 %v460_v32 }
 0x3b2   :  { %586 = vrot.lane.b32.xlu1 %v472_v33, %s2118_s30 }
 0x3bb   :  { %v2005_v57 = vpop.eup %2004 }
 0x3bc   :  { %463 = vrot.lane.b32.xlu0 %v2005_v57, %s2118_s30 }
 0x424   :  { %v587_v22 = vpop.permute.xlu1 %586 }
 0x42e   :  { %v464_v59 = vpop.permute.xlu0 %463 }
 0x42f   :  { %v466_v60 = vmul.f32 %v464_v59, %v459_v31 }
 0x431   :  { %468 = vrot.lane.b32.xlu0 %v466_v60, %s2118_s30 }
 0x4a3   :  { %v469_v61 = vpop.permute.xlu0 %468 }
 0x4a4   :  { %v471_v62 = vsel %vm242_vm3, %v469_v61, 0.0 }
 0x4a5   :  { %1679 = vmatmul.mubr.msk.f32.vlgmr.msra.gmra.mrb[6].mxu0 %vm475_vm5, %v471_v62 }
 0x4a6   :  { %1889 = vmatpush1.bf16.msra.mxu0 %v2338_v41  ;;  %800 = vmatprep.mubr.f32.mxu0 %v2116_v1 }
 0x4a7   :  { %1891 = vmatprep.subr.bf16.mxu0 %v2340_v42 }
 0x4aa   :  { %1893 = vmatpush1.bf16.msra.mxu0 %v2357_v47 }
 0x4ab   :  { %1895 = vmatprep.subr.bf16.mxu0 %v2361_v48 }
 0x4ae   :  { %1897 = vmatpush1.bf16.msra.mxu0 %v2377_v53 }
 0x4af   :  { %1899 = vmatprep.subr.bf16.mxu0 %v2381_v54 }
 0x4b2   :  { %1901 = vmatpush1.bf16.msra.mxu0 %v2392_v58 }
 0x4b3   :  { %1919 = vmatprep.subr.bf16.mxu0 %v2327_v37 }
 0x578   :  { %v545_v5 = vpop.f32.mrb[6].mxu0 }
 0x579   :  { %v547_v6 = vpop.f32.mrb[7].mxu0 }
 0x57a   :  { %v552_v7 = vcombine.low %v545_v5, %v547_v6 }
 0x57c   :  { %v559_v8 = vrot.slane %v552_v7, %v2414_v4 }
 0x57e   :  { %v566_v11 = vrot.slane %v559_v8, %v2414_v4 }
 0x580   :  { %v568_v14 = vadd.f32 %v566_v11, %v474_v13 }
 0x582   :  { %2006 = vtanh.f32 %v568_v14 }
 0x58c   :  { %v2007_v15 = vpop.eup %2006 }
 0x58d   :  { %v574_v16 = vrot.slane %v2007_v15, %v2298_v10  ;;  %v578_v17 = vrot.slane %v2007_v15, %v2304_v12 }
 0x58f   :  { %v581_v18 = vmul.f32 0.5, %v574_v16  ;;  %v582_v19 = vmul.f32 %v578_v17, %v2308_v24 }
 0x591   :  { %v583_v9 = vadd.f32 0.5, %v581_v18  ;;  %v584_v20 = vadd.f32 %v582_v19, %v2312_v27 }
 0x593   :  { %v590_v21 = vmul.f32 %v584_v20, %v583_v9  ;;  %v589_v23 = vmul.f32 %v587_v22, %v583_v9 }
 0x595   :  { %592 = vrot.lane.b32.xlu1 %v590_v21, %s2118_s30 }
 0x607   :  { %v593_v25 = vpop.permute.xlu1 %592 }
 0x608   :  { %v595_v26 = vadd.f32 %v593_v25, %v589_v23 }
 0x60a   :  { %2008 = vtanh.f32 %v595_v26 }
 0x614   :  { %v2009_v28 = vpop.eup %2008 }
 0x615   :  { %v2423_v29 = vmul.f32 %v2009_v28, %v584_v20 }
 0x617   :  { %606 = vrot.lane.b32.xlu0 %v2423_v29, %s2118_s30 }
 0x689   :  { %v607_v30 = vpop.permute.xlu0 %606 }
 0x68a   :  { %1680 = vmatmul.mubr.msk.f32.vlgmr.msra.gmra.mrb[2].mxu1 %vm475_vm5, %v607_v30  ;;  %v857_v30 = vld [vmem:[#allocation3 + $0x4] ss:$8 sm:$0x3] }
 0x68b   :  { %1905 = vmatpush1.bf16.msra.mxu1 %v2338_v41  ;;  %926 = vmatprep.mubr.f32.mxu1 %v2116_v1 }
 0x68c   :  { %1907 = vmatprep.subr.bf16.mxu1 %v2340_v42 }
 0x68f   :  { %1909 = vmatpush1.bf16.msra.mxu1 %v2357_v47 }
 0x690   :  { %1911 = vmatprep.subr.bf16.mxu1 %v2361_v48 }
 0x693   :  { %1913 = vmatpush1.bf16.msra.mxu1 %v2377_v53 }
 0x694   :  { %1915 = vmatprep.subr.bf16.mxu1 %v2381_v54 }
 0x697   :  { %1917 = vmatpush1.bf16.msra.mxu1 %v2392_v58 }
 0x698   :  { %1935 = vmatprep.subr.bf16.mxu1 %v2327_v37 }
 0x75d   :  { %v676_v31 = vpop.f32.mrb[2].mxu1 }
 0x75e   :  { %v678_v32 = vpop.f32.mrb[3].mxu1 }
 0x75f   :  { %v683_v33 = vcombine.low %v676_v31, %v678_v32 }
 0x761   :  { %v690_v34 = vrot.slane %v683_v33, %v2414_v4 }
 0x763   :  { %v697_v35 = vrot.slane %v690_v34, %v2414_v4 }
 0x765   :  { %v699_v38 = vadd.f32 %v697_v35, %v605_v36 }
 0x767   :  { %2010 = vtanh.f32 %v699_v38 }
 0x771   :  { %v2011_v39 = vpop.eup %2010 }
 0x772   :  { %v705_v40 = vrot.slane %v2011_v39, %v2298_v10  ;;  %v709_v43 = vrot.slane %v2011_v39, %v2304_v12 }
 0x774   :  { %v712_v44 = vmul.f32 0.5, %v705_v40  ;;  %v713_v45 = vmul.f32 %v709_v43, %v2308_v24 }
 0x776   :  { %v714_v46 = vadd.f32 0.5, %v712_v44  ;;  %v715_v49 = vadd.f32 %v713_v45, %v2312_v27 }
 0x778   :  { %v717_v50 = vmul.f32 %v715_v49, %v714_v46  ;;  %v716_v51 = vmul.f32 %v714_v46, %v595_v26 }
 0x77a   :  { %719 = vrot.lane.b32.xlu1 %v717_v50, %s2118_s30 }
 0x7ec   :  { %v720_v52 = vpop.permute.xlu1 %719 }
 0x7ed   :  { %v722_v55 = vadd.f32 %v720_v52, %v716_v51 }
 0x7ef   :  { %2012 = vtanh.f32 %v722_v55 }
 0x7f9   :  { %v2013_v56 = vpop.eup %2012 }
 0x7fa   :  { %v2444_v57 = vmul.f32 %v2013_v56, %v715_v49 }
 0x7fc   :  { %732 = vrot.lane.b32.xlu0 %v2444_v57, %s2118_s30 }
 0x86e   :  { %v733_v59 = vpop.permute.xlu0 %732 }
 0x86f   :  { %1681 = vmatmul.mubr.msk.f32.vlgmr.msra.gmra.mrb[8].mxu0 %vm475_vm5, %v733_v59  ;;  %v983_v59 = vld [vmem:[#allocation3 + $0x5] ss:$8 sm:$0x3] }
 0x870   :  { %1921 = vmatpush1.bf16.msra.mxu0 %v2338_v41  ;;  %1052 = vmatprep.mubr.f32.mxu0 %v2116_v1 }
 0x871   :  { %1923 = vmatprep.subr.bf16.mxu0 %v2340_v42 }
 0x874   :  { %1925 = vmatpush1.bf16.msra.mxu0 %v2357_v47 }
 0x875   :  { %1927 = vmatprep.subr.bf16.mxu0 %v2361_v48 }
 0x878   :  { %1929 = vmatpush1.bf16.msra.mxu0 %v2377_v53 }
 0x879   :  { %1931 = vmatprep.subr.bf16.mxu0 %v2381_v54 }
 0x87c   :  { %1933 = vmatpush1.bf16.msra.mxu0 %v2392_v58 }
 0x87d   :  { %1951 = vmatprep.subr.bf16.mxu0 %v2327_v37 }
 0x942   :  { %v802_v60 = vpop.f32.mrb[8].mxu0 }
 0x943   :  { %v804_v61 = vpop.f32.mrb[9].mxu0 }
 0x944   :  { %v809_v62 = vcombine.low %v802_v60, %v804_v61 }
 0x946   :  { %v816_v63 = vrot.slane %v809_v62, %v2414_v4 }
 0x948   :  { %v823_v2 = vrot.slane %v816_v63, %v2414_v4 }
 0x94a   :  { %v825_v5 = vadd.f32 %v823_v2, %v731_v3 }
 0x94c   :  { %2014 = vtanh.f32 %v825_v5 }
 0x956   :  { %v2015_v6 = vpop.eup %2014 }
 0x957   :  { %v831_v7 = vrot.slane %v2015_v6, %v2298_v10  ;;  %v835_v8 = vrot.slane %v2015_v6, %v2304_v12 }
 0x959   :  { %v838_v11 = vmul.f32 0.5, %v831_v7  ;;  %v839_v13 = vmul.f32 %v835_v8, %v2308_v24 }
 0x95b   :  { %v840_v14 = vadd.f32 0.5, %v838_v11  ;;  %v841_v15 = vadd.f32 %v839_v13, %v2312_v27 }
 0x95d   :  { %v843_v16 = vmul.f32 %v841_v15, %v840_v14  ;;  %v842_v17 = vmul.f32 %v840_v14, %v722_v55 }
 0x95f   :  { %845 = vrot.lane.b32.xlu1 %v843_v16, %s2118_s30 }
 0x9d1   :  { %v846_v18 = vpop.permute.xlu1 %845 }
 0x9d2   :  { %v848_v19 = vadd.f32 %v846_v18, %v842_v17 }
 0x9d4   :  { %2016 = vtanh.f32 %v848_v19 }
 0x9de   :  { %v2017_v9 = vpop.eup %2016 }
 0x9df   :  { %v2465_v20 = vmul.f32 %v2017_v9, %v841_v15 }
 0x9e1   :  { %858 = vrot.lane.b32.xlu0 %v2465_v20, %s2118_s30 }
 0xa53   :  { %v859_v21 = vpop.permute.xlu0 %858 }
 0xa54   :  { %1682 = vmatmul.mubr.msk.f32.vlgmr.msra.gmra.mrb[4].mxu1 %vm475_vm5, %v859_v21 }
 0xa55   :  { %1937 = vmatpush1.bf16.msra.mxu1 %v2338_v41  ;;  %1178 = vmatprep.mubr.f32.mxu1 %v2116_v1 }
 0xa56   :  { %1939 = vmatprep.subr.bf16.mxu1 %v2340_v42 }
 0xa59   :  { %1941 = vmatpush1.bf16.msra.mxu1 %v2357_v47 }
 0xa5a   :  { %1943 = vmatprep.subr.bf16.mxu1 %v2361_v48 }
 0xa5d   :  { %1945 = vmatpush1.bf16.msra.mxu1 %v2377_v53 }
 0xa5e   :  { %1947 = vmatprep.subr.bf16.mxu1 %v2381_v54 }
 0xa61   :  { %1949 = vmatpush1.bf16.msra.mxu1 %v2392_v58 }
 0xa62   :  { %1967 = vmatprep.subr.bf16.mxu1 %v2327_v37 }
 0xb27   :  { %v928_v22 = vpop.f32.mrb[4].mxu1 }
 0xb28   :  { %v930_v23 = vpop.f32.mrb[5].mxu1 }
 0xb29   :  { %v935_v25 = vcombine.low %v928_v22, %v930_v23 }
 0xb2b   :  { %v942_v26 = vrot.slane %v935_v25, %v2414_v4 }
 0xb2d   :  { %v949_v28 = vrot.slane %v942_v26, %v2414_v4 }
 0xb2f   :  { %v951_v31 = vadd.f32 %v949_v28, %v857_v30 }
 0xb31   :  { %2018 = vtanh.f32 %v951_v31 }
 0xb3b   :  { %v2019_v32 = vpop.eup %2018 }
 0xb3c   :  { %v957_v33 = vrot.slane %v2019_v32, %v2298_v10  ;;  %v961_v34 = vrot.slane %v2019_v32, %v2304_v12 }
 0xb3e   :  { %v964_v35 = vmul.f32 0.5, %v957_v33  ;;  %v965_v36 = vmul.f32 %v961_v34, %v2308_v24 }
 0xb40   :  { %v966_v38 = vadd.f32 0.5, %v964_v35  ;;  %v967_v37 = vadd.f32 %v965_v36, %v2312_v27 }
 0xb42   :  { %v969_v39 = vmul.f32 %v967_v37, %v966_v38  ;;  %v968_v40 = vmul.f32 %v966_v38, %v848_v19 }
 0xb44   :  { %971 = vrot.lane.b32.xlu1 %v969_v39, %s2118_s30  ;;  %v1235_v39 = vld [vmem:[#allocation3 + $0x7] ss:$8 sm:$0x3] }
 0xbb6   :  { %v972_v43 = vpop.permute.xlu1 %971 }
 0xbb7   :  { %v974_v44 = vadd.f32 %v972_v43, %v968_v40 }
 0xbb9   :  { %2020 = vtanh.f32 %v974_v44 }
 0xbc3   :  { %v2021_v45 = vpop.eup %2020 }
 0xbc4   :  { %v2486_v46 = vmul.f32 %v2021_v45, %v967_v37 }
 0xbc6   :  { %984 = vrot.lane.b32.xlu0 %v2486_v46, %s2118_s30 }
 0xc38   :  { %v985_v49 = vpop.permute.xlu0 %984 }
 0xc39   :  { %1683 = vmatmul.mubr.msk.f32.vlgmr.msra.gmra.mrb[10].mxu0 %vm475_vm5, %v985_v49 }
 0xc3a   :  { %1953 = vmatpush1.bf16.msra.mxu0 %v2338_v41  ;;  %1304 = vmatprep.mubr.f32.mxu0 %v2116_v1 }
 0xc3b   :  { %1955 = vmatprep.subr.bf16.mxu0 %v2340_v42 }
 0xc3e   :  { %1957 = vmatpush1.bf16.msra.mxu0 %v2357_v47 }
 0xc3f   :  { %1959 = vmatprep.subr.bf16.mxu0 %v2361_v48 }
 0xc42   :  { %1961 = vmatpush1.bf16.msra.mxu0 %v2377_v53 }
 0xc43   :  { %1963 = vmatprep.subr.bf16.mxu0 %v2381_v54 }
 0xc46   :  { %1965 = vmatpush1.bf16.msra.mxu0 %v2392_v58 }
 0xc47   :  { %1982 = vmatprep.subr.bf16.mxu0 %v2114_v0 }
 0xd0c   :  { %v1054_v50 = vpop.f32.mrb[10].mxu0 }
 0xd0d   :  { %v1056_v51 = vpop.f32.mrb[11].mxu0 }
 0xd0e   :  { %v1061_v52 = vcombine.low %v1054_v50, %v1056_v51 }
 0xd10   :  { %v1068_v55 = vrot.slane %v1061_v52, %v2414_v4 }
 0xd12   :  { %v1075_v56 = vrot.slane %v1068_v55, %v2414_v4 }
 0xd14   :  { %v1077_v60 = vadd.f32 %v1075_v56, %v983_v59 }
 0xd16   :  { %2022 = vtanh.f32 %v1077_v60 }
 0xd20   :  { %v2023_v61 = vpop.eup %2022 }
 0xd21   :  { %v1083_v62 = vrot.slane %v2023_v61, %v2298_v10  ;;  %v1087_v63 = vrot.slane %v2023_v61, %v2304_v12 }
 0xd23   :  { %v1090_v2 = vmul.f32 0.5, %v1083_v62  ;;  %v1091_v3 = vmul.f32 %v1087_v63, %v2308_v24 }
 0xd25   :  { %v1092_v5 = vadd.f32 0.5, %v1090_v2  ;;  %v1093_v6 = vadd.f32 %v1091_v3, %v2312_v27 }
 0xd27   :  { %v1095_v7 = vmul.f32 %v1093_v6, %v1092_v5  ;;  %v1094_v8 = vmul.f32 %v1092_v5, %v974_v44 }
 0xd29   :  { %1097 = vrot.lane.b32.xlu1 %v1095_v7, %s2118_s30 }
 0xd9b   :  { %v1098_v11 = vpop.permute.xlu1 %1097 }
 0xd9c   :  { %v1100_v13 = vadd.f32 %v1098_v11, %v1094_v8 }
 0xd9e   :  { %2024 = vtanh.f32 %v1100_v13 }
 0xda8   :  { %v2025_v14 = vpop.eup %2024 }
 0xda9   :  { %v2507_v15 = vmul.f32 %v2025_v14, %v1093_v6 }
 0xdab   :  { %1110 = vrot.lane.b32.xlu0 %v2507_v15, %s2118_s30 }
 0xe1d   :  { %v1111_v16 = vpop.permute.xlu0 %1110 }
 0xe1e   :  { %1684 = vmatmul.mubr.msk.f32.vlgmr.msra.gmra.mrb[6].mxu1 %vm475_vm5, %v1111_v16 }
 0xe1f   :  { %1969 = vmatpush1.bf16.msra.mxu1 %v2338_v41  ;;  %1429 = vmatprep.mubr.f32.mxu1 %v2116_v1 }
 0xe20   :  { %1971 = vmatprep.subr.bf16.mxu1 %v2340_v42  ;;  %v1109_v42 = vld [vmem:[#allocation3 + $0x6] ss:$8 sm:$0x3] }
 0xe23   :  { %1973 = vmatpush1.bf16.msra.mxu1 %v2357_v47 }
 0xe24   :  { %1975 = vmatprep.subr.bf16.mxu1 %v2361_v48 }
 0xe27   :  { %1977 = vmatpush1.bf16.msra.mxu1 %v2377_v53 }
 0xe28   :  { %1979 = vmatprep.subr.bf16.mxu1 %v2381_v54 }
 0xe2b   :  { %1981 = vmatpush1.bf16.msra.mxu1 %v2392_v58 }
 0xe2c   :  { %1802 = vmatprep.subr.mxu1 %v2116_v1 }
 0xef1   :  { %v1180_v17 = vpop.f32.mrb[6].mxu1 }
 0xef2   :  { %v1182_v18 = vpop.f32.mrb[7].mxu1 }
 0xef3   :  { %v1187_v19 = vcombine.low %v1180_v17, %v1182_v18 }
 0xef5   :  { %v1194_v41 = vrot.slane %v1187_v19, %v2414_v4 }
 0xef7   :  { %v1201_v9 = vrot.slane %v1194_v41, %v2414_v4 }
 0xef9   :  { %v1203_v21 = vadd.f32 %v1201_v9, %v1109_v42  ;;  %v1487_v42 = vld [vmem:[#allocation7 + $0x8] sm:$0xff] }
 0xefb   :  { %2026 = vtanh.f32 %v1203_v21  ;;  %v1488_v21 = vld [vmem:[#allocation7 + $0x10] sm:$0xff] }
 0xf05   :  { %v2027_v47 = vpop.eup %2026 }
 0xf06   :  { %v1209_v48 = vrot.slane %v2027_v47, %v2298_v10  ;;  %v1213_v53 = vrot.slane %v2027_v47, %v2304_v12 }
 0xf08   :  { %v1216_v54 = vmul.f32 0.5, %v1209_v48  ;;  %v1217_v58 = vmul.f32 %v1213_v53, %v2308_v24  ;;  %v1489_v48 = vld [vmem:[#allocation7 + $0x18] sm:$0xff] }
 0xf0a   :  { %v1218_v22 = vadd.f32 0.5, %v1216_v54  ;;  %v1219_v23 = vadd.f32 %v1217_v58, %v2312_v27 }
 0xf0c   :  { %v1221_v25 = vmul.f32 %v1219_v23, %v1218_v22  ;;  %v1220_v26 = vmul.f32 %v1218_v22, %v1100_v13 }
 0xf0e   :  { %1223 = vrot.lane.b32.xlu1 %v1221_v25, %s2118_s30  ;;  %v1570_v25 = vld [vmem:[#allocation7 + $0x22] sm:$0x1] }
 0xf80   :  { %v1224_v28 = vpop.permute.xlu1 %1223 }
 0xf81   :  { %v1226_v30 = vadd.f32 %v1224_v28, %v1220_v26  ;;  %v2121_v26 = vmov 0  }
 0xf82   :  { %2001 = vset.pattern.permute.xlu0 %v2121_v26 }
 0xf83   :  { %2028 = vtanh.f32 %v1226_v30 }
 0xf8d   :  { %v2029_v31 = vpop.eup %2028 }
 0xf8e   :  { %v2528_v32 = vmul.f32 %v2029_v31, %v1219_v23 }
 0xf90   :  { %1236 = vrot.lane.b32.xlu0 %v2528_v32, %s2118_s30 }
0x1002   :  { %v1237_v33 = vpop.permute.xlu0 %1236 }
0x1003   :  { %1685 = vmatmul.mubr.msk.f32.vlgmr.msra.gmra.mrb[12].mxu0 %vm475_vm5, %v1237_v33  ;;  %v1569_v33 = vld [vmem:[#allocation7 + $0x21] sm:$0x1] }
0x1004   :  { %1799 = vmatprep.mubr.msk.f32.mxu0 %vm2115_vm0, %v2116_v1 }
0x10d6   :  { %v1306_v34 = vpop.f32.mrb[12].mxu0 }
0x10d7   :  { %v1308_v35 = vpop.f32.mrb[13].mxu0 }
0x10d8   :  { %v1313_v36 = vcombine.low %v1306_v34, %v1308_v35 }
0x10da   :  { %v1320_v38 = vrot.slane %v1313_v36, %v2414_v4 }
0x10dc   :  { %v1327_v37 = vrot.slane %v1320_v38, %v2414_v4 }
0x10de   :  { %v1329_v40 = vadd.f32 %v1327_v37, %v1235_v39 }
0x10e0   :  { %2030 = vtanh.f32 %v1329_v40 }
0x10ea   :  { %v2031_v43 = vpop.eup %2030 }
0x10eb   :  { %v1335_v44 = vrot.slane %v2031_v43, %v2298_v10  ;;  %v1339_v45 = vrot.slane %v2031_v43, %v2304_v12 }
0x10ed   :  { %v1342_v49 = vmul.f32 0.5, %v1335_v44  ;;  %v1343_v50 = vmul.f32 %v1339_v45, %v2308_v24 }
0x10ef   :  { %v1344_v51 = vadd.f32 0.5, %v1342_v49  ;;  %v1345_v52 = vadd.f32 %v1343_v50, %v2312_v27 }
0x10f1   :  { %v1347_v55 = vmul.f32 %v1345_v52, %v1344_v51  ;;  %v1346_v56 = vmul.f32 %v1344_v51, %v1226_v30 }
0x10f3   :  { %1349 = vrot.lane.b32.xlu1 %v1347_v55, %s2118_s30 }
0x1165   :  { %v1350_v59 = vpop.permute.xlu1 %1349 }
0x1166   :  { %v1352_v60 = vadd.f32 %v1350_v59, %v1346_v56 }
0x1168   :  { %2032 = vtanh.f32 %v1352_v60 }
0x1172   :  { %v2033_v61 = vpop.eup %2032 }
0x1173   :  { %v1354_v62 = vmul.f32 %v2033_v61, %v1345_v52 }
0x1175   :  { %1361 = vrot.lane.b32.xlu0 %v1354_v62, %s2118_s30 }
0x1179   :  { %599 = vrot.lane.b32.xlu0 %v2423_v29, %s2120_s2 }
0x117d   :  { %852 = vrot.lane.b32.xlu0 %v2465_v20, %s2120_s2 }
0x1181   :  { %1104 = vrot.lane.b32.xlu0 %v2507_v15, %s2120_s2 }
0x1185   :  { %1356 = vrot.lane.b32.xlu0 %v1354_v62, %s2120_s2 }
0x1189   :  { %1573 = vperm.xlu0 %2001, %v1570_v25  }
0x11e7   :  { %v1362_v63 = vpop.permute.xlu0 %1361 }
0x11e8   :  { %1686 = vmatmul.mubr.msk.f32.vlgmr.msra.gmra.mrb[8].mxu1 %vm475_vm5, %v1362_v63 }
0x11e9   :  { %1804 = vmatprep.mubr.msk.f32.mxu1 %vm2115_vm0, %v2116_v1  ;;  %v1360_v1 = vld [vmem:[#allocation3 + $0x7] ss:$8 sm:$0x3] }
0x11eb   :  { %v600_v2 = vpop.permute.xlu0 %599 }
0x11ec   :  { %603 = vst.msk [vmem:[#allocation2] sm:$0x1] %vm602_vm6, %v600_v2 }
0x11ef   :  { %v853_v3 = vpop.permute.xlu0 %852 }
0x11f0   :  { %855 = vst.msk [vmem:[#allocation2 + $0x2] sm:$0x1] %vm602_vm6, %v853_v3 }
0x11f3   :  { %v1105_v29 = vpop.permute.xlu0 %1104 }
0x11f4   :  { %1107 = vst.msk [vmem:[#allocation2 + $0x4] sm:$0x1] %vm602_vm6, %v1105_v29 }
0x11f7   :  { %v1357_v20 = vpop.permute.xlu0 %1356 }
0x11f8   :  { %1359 = vst.msk [vmem:[#allocation2 + $0x6] sm:$0x1] %vm602_vm6, %v1357_v20 }
0x1208   :  { %v1574_v34 = vpop.permute.xlu0 %1573 }
0x12bb   :  { %v1431_v5 = vpop.f32.mrb[8].mxu1 }
0x12bc   :  { %v1433_v6 = vpop.f32.mrb[9].mxu1 }
0x12bd   :  { %v1438_v7 = vcombine.low %v1431_v5, %v1433_v6 }
0x12bf   :  { %v1445_v8 = vrot.slane %v1438_v7, %v2414_v4 }
0x12c1   :  { %v1452_v11 = vrot.slane %v1445_v8, %v2414_v4 }
0x12c3   :  { %v1454_v13 = vadd.f32 %v1452_v11, %v1360_v1 }
0x12c5   :  { %2034 = vtanh.f32 %v1454_v13 }
0x12cf   :  { %v2035_v14 = vpop.eup %2034 }
0x12d0   :  { %v1460_v15 = vrot.slane %v2035_v14, %v2298_v10  ;;  %v1464_v16 = vrot.slane %v2035_v14, %v2304_v12 }
0x12d2   :  { %v1467_v17 = vmul.f32 0.5, %v1460_v15  ;;  %v1468_v18 = vmul.f32 %v1464_v16, %v2308_v24  ;;  %v1486_v24 = vld [vmem:[#allocation7] sm:$0xff] }
0x12d3   :  { %v1983_v47 = vpack.c.bf16 %v1487_v42, %v1486_v24 }
0x12d4   :  { %v1469_v19 = vadd.f32 0.5, %v1467_v17  ;;  %v1470_v41 = vadd.f32 %v1468_v18, %v2312_v27 }
0x12d5   :  { %1984 = vmatpush3.bf16.msra.mxu0 %v1983_v47 }
0x12d6   :  { %v1472_v9 = vmul.f32 %v1470_v41, %v1469_v19  ;;  %v1471_v10 = vmul.f32 %v1469_v19, %v1352_v60  ;;  %1985 = vmatprep.subr.bf16.mxu0 %v2114_v0  ;;  %v1687_v0 = vld [vmem:[#allocation7 + $0x20] ss:$0 sm:$0xff] }
0x12d8   :  { %1474 = vrot.lane.b32.xlu1 %v1472_v9, %s2118_s30  ;;  %s2082_s30 = scalar_lea.vmem %s1662_s29, 16 }
0x12d9   :  { %p2083_p2 = scmp.ne.s32.totalorder %s1662_s29, %s2082_s30  ;;  %p2088_p4 = scmp.lt.s32.totalorder %s2086_s6, %s2082_s30 }
0x12db   :  { %p2089_p5 = por %p2088_p4, %p2087_p3 }
0x12dc   :  { %726 = vrot.lane.b32.xlu1 %v2444_v57, %s2120_s2  ;;  %v1986_v57 = vpack.c.bf16 %v1489_v48, %v1488_v21 }
0x12dd   :  { %p2090_p6 = pnand %p2089_p5, %p2083_p2 }
0x12de   :  { %1987 = vmatpush3.bf16.msra.mxu0 %v1986_v57 }
0x12e0   :  { %978 = vrot.lane.b32.xlu1 %v2486_v46, %s2120_s2 }
0x12e4   :  { %1230 = vrot.lane.b32.xlu1 %v2528_v32, %s2120_s2 }
0x134a   :  { %v1475_v12 = vpop.permute.xlu1 %1474 }
0x134b   :  { %v1477_v4 = vadd.f32 %v1475_v12, %v1471_v10 }
0x134d   :  { %2036 = vtanh.f32 %v1477_v4 }
0x134e   :  { %v727_v27 = vpop.permute.xlu1 %726 }
0x134f   :  { %729 = vst.msk [vmem:[#allocation2 + $0x1] sm:$0x1] %vm602_vm6, %v727_v27 }
0x1352   :  { %v979_v46 = vpop.permute.xlu1 %978 }
0x1353   :  { %981 = vst.msk [vmem:[#allocation2 + $0x3] sm:$0x1] %vm602_vm6, %v979_v46 }
0x1356   :  { %v1231_v53 = vpop.permute.xlu1 %1230 }
0x1357   :  { %v2037_v54 = vpop.eup %2036  ;;  %1233 = vst.msk [vmem:[#allocation2 + $0x5] sm:$0x1] %vm602_vm6, %v1231_v53 }
0x1358   :  { %v1479_v58 = vmul.f32 %v2037_v54, %v1470_v41 }
0x135a   :  { %1481 = vrot.lane.b32.xlu1 %v1479_v58, %s2120_s2 }
0x13cc   :  { %v1482_v22 = vpop.permute.xlu1 %1481 }
0x13cd   :  { %1484 = vst.msk [vmem:[#allocation2 + $0x7] sm:$0x1] %vm602_vm6, %v1482_v22 }
0x13d4   :  { %v1485_v23 = vld [vmem:[#allocation2] sm:$0xff] }
0x13d5   :  { %1800 = vmatmul.mubr.msk.f32.vlgmr.msra.gmra.mrb[14].mxu0 %vm242_vm3, %v1485_v23 }
0x14a8   :  { %v1564_v28 = vpop.f32.mrb[14].mxu0 }
0x14a9   :  { %v1565_v30 = vadd.f32 %v1687_v0, %v1564_v28  ;;  %v1801_v31 = vpop.f32.mrb[15].mxu0 }
0x14ab   :  { %v1568_v32 = vmax.f32 %v1565_v30, 0.0 }
0x14ad   :  { %1803 = vmatpush3.xpose.msk.msra.mxu1 %vm475_vm5, %v1568_v32 }
0x14b0   :  { %1805 = vmatmul.mubr.msk.f32.vlgmr.msra.gmra.mrb[10].mxu1 %vm475_vm5, %v1569_v33 }
0x1583   :  { %v1648_v35 = vpop.f32.mrb[10].mxu1 }
0x1584   :  { %v1806_v36 = vpop.f32.mrb[11].mxu1  ;;  %v1649_v38 = vadd.f32 %v1648_v35, %v1574_v34 }
0x1586   :  { %v1652_v37 = vmax.f32 %v1649_v38, 0.0 }
0x1588   :  { %1654 = vst.msk [vmem:[#allocation9] sm:$0x1] %vm1653_vm7, %v1652_v37 }
0x1589   :  { %2093 = shalt.err (!%p2090_p6)
}
0x158a   :  { %s2094_s9 = scalar_lea.hbm %s2596_s5, 16 }
0x158b   :  { %p2095_p7 = scmp.ne.s32.totalorder %s2596_s5, %s2094_s9  ;;  %p2098_p8 = scmp.lt.u32.totalorder %s2094_s9, %s2596_s5 }
0x158d   :  { %p2100_p9 = pnand %p2098_p8, %p2095_p7 }
0x158f   :  { %2103 = shalt.err (!%p2100_p9)
}
0x1590   :  { %1664 = dma.vmem_to_hbm [thread:$0]  %s1662_s29, 16, %s2596_s5, [#allocation6]  }
0x1591   :  { %2108 = dma.done.wait [#allocation6], 16  }
0x1592   :  { %2109 = vsyncadd [#allocation6], 4294967280 }
0x1593   :  { %1668 = vsyncpa [#allocation5], 1 }
0x1594   :  { %1669 = vsyncpa [#allocation8], 1 }
0x1595   :  { %1670 = vsyncpa [#allocation6], 1 }

</bundles_post_ra>
